<compile_context>
chip_gen: v5e
topology: v5e:2x2
jax: 0.10.0
libtpu: 0.0.40
codegen_flags: <defaults>
</compile_context>

<pallas_src>
import numpy as np
import jax
import jax.numpy as jnp
from jax import lax
from jax.experimental import pallas as pl
from jax.experimental.pallas import tpu as pltpu

EMBED_DIM = 128
NUM_HEADS = 8
HEAD_DIM = EMBED_DIM // NUM_HEADS
FF_SIZES = (128, 256, 256, 64, 5)
HID_PAD = 128                      # lane-dense padding for the 64-wide penultimate FF layer
OUT_PAD = 128                      # lane-dense padded output width (first 5 columns are real)
SQRT2 = float(np.sqrt(2.0))
NEG_BIG = -1e30                    # stands in for -inf of torch's masked_fill (safe for softmax)


def _gelu_exact(u):
    # torch.nn.GELU() default (approximate='none'): 0.5*x*(1+erf(x/sqrt(2)))
    return 0.5 * u * (1.0 + lax.erf(u / SQRT2))


def decoder_kernel(x_ref, kbias_ref,
                   wsv_ref, bsv_ref,            # fused [score | value] projection
                   w0_ref, b0_ref,              # fused out_proj + first FF linear
                   fw1, fb1, fw2, fb2, fw3, fb3, fw4, fb4,
                   out_ref):
    Bt, S, E = x_ref.shape
    x2 = x_ref[...].reshape(Bt * S, E)                      # (Bt*S, E): big-M rows for the MXU

    # One fused matmul: columns [0, E) are folded attention scores (replicated per head's d lanes),
    # columns [E, 2E) are the value projection.
    sv = jnp.dot(x2, wsv_ref[...], preferred_element_type=jnp.float32) + bsv_ref[...]  # (Bt*S, 2E)
    sv = sv.reshape(Bt, S, 2 * E)
    s3 = sv[:, :, :E] + kbias_ref[...]                      # (Bt, S, E) scores + key-padding bias
    v3 = sv[:, :, E:]                                       # (Bt, S, E) values

    m = jnp.max(s3, axis=1, keepdims=True)                  # (Bt, 1, E) per-(batch, head) max
    p = jnp.exp(s3 - m)                                     # (Bt, S, E) unnormalized weights
    denom = jnp.sum(p, axis=1)                              # (Bt, E) (constant within each head)
    num = jnp.sum(p * v3, axis=1)                           # (Bt, E)
    ctx = num / denom                                       # normalized attention pooling

    # out_proj fused with the (GELU-free) first feed-forward Linear -> single (E, 128) matmul
    h = jnp.dot(ctx, w0_ref[...], preferred_element_type=jnp.float32) + b0_ref[...]    # (Bt, 128)

    # remaining feedforward: (GELU, Linear) x 4 ; layers 3/4 zero-padded to 128 lanes
    for w_r, b_r in ((fw1, fb1), (fw2, fb2), (fw3, fb3), (fw4, fb4)):
        h = _gelu_exact(h)
        h = jnp.dot(h, w_r[...], preferred_element_type=jnp.float32) + b_r[...]
    out_ref[...] = h                                        # (Bt, OUT_PAD)


def _round_up(x, m):
    return ((x + m - 1) // m) * m


def decoder_forward(x, key_padding_mask, flat_params, *, block_b=None):
    B, S, E = x.shape
    assert E == EMBED_DIM

    if block_b is None:
        block_b = min(128, _round_up(B, 8))          # multiple of 8, big enough to fill MXU rows
    B_pad = _round_up(B, block_b)

    xp = x.astype(jnp.float32)
    kbias = jnp.where(key_padding_mask, jnp.float32(NEG_BIG), jnp.float32(0.0)).astype(jnp.float32)
    kbias = kbias.reshape(B, S, 1)
    if B_pad != B:                                   # pad batch; padded rows are unmasked zeros
        xp = jnp.pad(xp, ((0, B_pad - B), (0, 0), (0, 0)))
        kbias = jnp.pad(kbias, ((0, B_pad - B), (0, 0), (0, 0)))

    inputs = [xp, kbias] + list(flat_params)

    def const_spec(a):
        nd = a.ndim
        # Constant block index -> DMA'd once, resident across all grid steps.
        return pl.BlockSpec(a.shape, lambda b, _nd=nd: (0,) * _nd)

    in_specs = [
        pl.BlockSpec((block_b, S, E), lambda b: (b, 0, 0)),
        pl.BlockSpec((block_b, S, 1), lambda b: (b, 0, 0)),
    ] + [const_spec(a) for a in flat_params]

    out = pl.pallas_call(
        decoder_kernel,
        out_shape=jax.ShapeDtypeStruct((B_pad, OUT_PAD), jnp.float32),
        grid_spec=pltpu.PrefetchScalarGridSpec(
            num_scalar_prefetch=0,
            grid=(B_pad // block_b,),
            in_specs=in_specs,
            out_specs=pl.BlockSpec((block_b, OUT_PAD), lambda b: (b, 0)),
        ),
        compiler_params=pltpu.CompilerParams(dimension_semantics=("parallel",)),
    )(*inputs)
    return out[:B, :FF_SIZES[-1]]


def init_torch_like_params(key):
    """Deterministic synthetic parameters with the same shapes torch would create."""
    ks = jax.random.split(key, 4 + 2 * len(FF_SIZES))

    def nrm(k, shape, scale=0.08):
        return scale * jax.random.normal(k, shape, dtype=jnp.float32)

    E = EMBED_DIM
    params = dict(
        in_proj_w=nrm(ks[0], (3 * E, E)),     # MultiheadAttention.in_proj_weight
        in_proj_b=nrm(ks[1], (3 * E,)),       # MultiheadAttention.in_proj_bias
        out_w=nrm(ks[2], (E, E)),             # out_proj.weight
        out_b=nrm(ks[3], (E,)),               # out_proj.bias
    )
    dims = (E,) + FF_SIZES
    ff = []
    for i in range(len(FF_SIZES)):
        w = nrm(ks[4 + 2 * i], (dims[i + 1], dims[i]))   # torch Linear weight (out, in)
        b = nrm(ks[5 + 2 * i], (dims[i + 1],))
        ff.append((w, b))
    params["ff"] = ff
    return params


def params_for_kernel(p):
    """Host-side folding:
       * all-ones query + head structure -> (E, E) score weight (lane-replicated per head),
       * score + value projections concatenated into one (E, 2E) weight,
       * out_proj folded into the first feed-forward Linear (no nonlinearity between them),
       * 64-wide and 5-wide layers zero-padded to 128 lanes,
       * all linear weights transposed to (in, out), biases made 2-D."""
    E, H, d = EMBED_DIM, NUM_HEADS, HEAD_DIM
    scale = 1.0 / float(np.sqrt(d))
    in_w, in_b = p["in_proj_w"], p["in_proj_b"]
    wq, wk, wv = in_w[:E], in_w[E:2 * E], in_w[2 * E:]
    bq, bk, bv = in_b[:E], in_b[E:2 * E], in_b[2 * E:]

    # all-ones query folded: q_vec[e] = sum_i wq[e, i] + bq[e]
    q_vec = jnp.sum(wq, axis=1) + bq                               # (E,)
    # scores[s, head h] = scale * sum_{e in h} q_vec[e] * (x[s] . wk[e] + bk[e])
    qk = q_vec[:, None] * wk                                       # (E, E_in)
    w_per_head = qk.reshape(H, d, E).sum(axis=1)                   # (H, E_in)
    b_per_head = (q_vec * bk).reshape(H, d).sum(axis=1)            # (H,)
    # replicate each head's weights across its d lanes -> scores land lane-dense in (.., E)
    w_score = jnp.repeat(w_per_head, d, axis=0).T * scale          # (E_in, E)
    b_score = jnp.repeat(b_per_head, d) * scale                    # (E,)

    # fuse score + value projections into one (E, 2E) weight
    wsv = jnp.concatenate([w_score, wv.T], axis=1)                 # (E, 2E)
    bsv = jnp.concatenate([b_score, bv]).reshape(1, 2 * E)         # (1, 2E)

    ff = list(p["ff"])
    # fuse out_proj with FF layer 0:  (ctx @ Wo^T + bo) @ W0^T + b0 = ctx @ (W0 Wo)^T + (W0 bo + b0)
    w0, b0 = ff[0]                                                 # (128, E), (128,)
    wo, bo = p["out_w"], p["out_b"]
    w_fused = jnp.dot(w0, wo, precision=lax.Precision.HIGHEST)     # (128, E)
    b_fused = jnp.dot(w0, bo, precision=lax.Precision.HIGHEST) + b0
    w0_k = w_fused.T                                               # (E, 128)
    b0_k = b_fused.reshape(1, -1)

    fw1, fb1 = ff[1][0].T, ff[1][1].reshape(1, -1)                 # (128, 256), (1, 256)
    fw2, fb2 = ff[2][0].T, ff[2][1].reshape(1, -1)                 # (256, 256), (1, 256)

    # layer 3: 256 -> 64, output padded to 128 lanes (padded lanes stay exactly 0 through GELU)
    w3, b3 = ff[3]
    fw3 = jnp.zeros((FF_SIZES[2], HID_PAD), jnp.float32).at[:, :FF_SIZES[3]].set(w3.T)
    fb3 = jnp.zeros((1, HID_PAD), jnp.float32).at[0, :FF_SIZES[3]].set(b3)

    # layer 4: 64 -> 5, input rows padded to 128 (zeros), output padded to OUT_PAD lanes
    w4, b4 = ff[4]
    fw4 = jnp.zeros((HID_PAD, OUT_PAD), jnp.float32).at[:FF_SIZES[3], :FF_SIZES[4]].set(w4.T)
    fb4 = jnp.zeros((1, OUT_PAD), jnp.float32).at[0, :FF_SIZES[4]].set(b4)

    flat = [wsv, bsv, w0_k, b0_k, fw1, fb1, fw2, fb2, fw3, fb3, fw4, fb4]
    return [a.astype(jnp.float32) for a in flat]


def reference_forward(x, key_padding_mask, p):
    """Pure-JAX replica of the torch forward (eval mode), for correctness checking."""
    B, S, E = x.shape
    H, d = NUM_HEADS, HEAD_DIM
    wq, wk, wv = p["in_proj_w"][:E], p["in_proj_w"][E:2 * E], p["in_proj_w"][2 * E:]
    bq, bk, bv = p["in_proj_b"][:E], p["in_proj_b"][E:2 * E], p["in_proj_b"][2 * E:]
    query = jnp.ones((B, 1, E), jnp.float32)
    q = query @ wq.T + bq
    k = x @ wk.T + bk
    v = x @ wv.T + bv
    qh = q.reshape(B, 1, H, d).transpose(0, 2, 1, 3)
    kh = k.reshape(B, S, H, d).transpose(0, 2, 1, 3)
    vh = v.reshape(B, S, H, d).transpose(0, 2, 1, 3)
    scores = (qh @ kh.transpose(0, 1, 3, 2)) / np.sqrt(d)            # (B, H, 1, S)
    bias = jnp.where(key_padding_mask, jnp.float32(NEG_BIG), jnp.float32(0.0)).astype(jnp.float32)
    scores = scores + bias.reshape(B, 1, 1, S)
    pw = jax.nn.softmax(scores, axis=-1)
    ctx = (pw @ vh).transpose(0, 2, 1, 3).reshape(B, 1, E)
    attn = ctx @ p["out_w"].T + p["out_b"]
    h = attn.reshape(B, E)
    for i, (w, b) in enumerate(p["ff"]):
        if i > 0:
            h = 0.5 * h * (1.0 + lax.erf(h / SQRT2))
        h = h @ w.T + b
    return h


if __name__ == "__main__":
    key = jax.random.PRNGKey(0)
    kx, km, kp = jax.random.split(key, 3)
    params = init_torch_like_params(kp)
    flat = params_for_kernel(params)

    # Small-shape check (batch padded 2 -> 8, single grid step).
    B, S = 2, 8
    x = jax.random.normal(kx, (B, S, EMBED_DIM), dtype=jnp.float32)
    mask = jax.random.bernoulli(km, 0.3, (B, S))       # True = masked key position
    mask = mask.at[:, 0].set(False)                    # guarantee >=1 valid key per row
    out = jax.block_until_ready(decoder_forward(x, mask, flat))
    with jax.default_matmul_precision("float32"):
        ref = jax.block_until_ready(reference_forward(x, mask, params))
    np.testing.assert_allclose(np.asarray(out), np.asarray(ref), rtol=5e-3, atol=5e-4)

    # Multi-step grid + batch padding path (B=20, block_b=8 -> grid of 3, padded to 24).
    kx2, km2 = jax.random.split(jax.random.PRNGKey(1), 2)
    B2 = 20
    x2 = jax.random.normal(kx2, (B2, S, EMBED_DIM), dtype=jnp.float32)
    mask2 = jax.random.bernoulli(km2, 0.3, (B2, S))
    mask2 = mask2.at[:, 0].set(False)
    out2 = jax.block_until_ready(decoder_forward(x2, mask2, flat, block_b=8))
    with jax.default_matmul_precision("float32"):
        ref2 = jax.block_until_ready(reference_forward(x2, mask2, params))
    np.testing.assert_allclose(np.asarray(out2), np.asarray(ref2), rtol=5e-3, atol=5e-4)

    print("KERNEL_OK")
</pallas_src>

<mosaic_0001>
module attributes {stable_mosaic.version = 11 : i64} {
  func.func @decoder_kernel(%arg0: i32, %arg1: memref<8x8x128xf32, #tpu.memory_space<vmem>>, %arg2: memref<8x8x1xf32, #tpu.memory_space<vmem>>, %arg3: memref<128x256xf32, #tpu.memory_space<vmem>>, %arg4: memref<1x256xf32, #tpu.memory_space<vmem>>, %arg5: memref<128x128xf32, #tpu.memory_space<vmem>>, %arg6: memref<1x128xf32, #tpu.memory_space<vmem>>, %arg7: memref<128x256xf32, #tpu.memory_space<vmem>>, %arg8: memref<1x256xf32, #tpu.memory_space<vmem>>, %arg9: memref<256x256xf32, #tpu.memory_space<vmem>>, %arg10: memref<1x256xf32, #tpu.memory_space<vmem>>, %arg11: memref<256x128xf32, #tpu.memory_space<vmem>>, %arg12: memref<1x128xf32, #tpu.memory_space<vmem>>, %arg13: memref<128x128xf32, #tpu.memory_space<vmem>>, %arg14: memref<1x128xf32, #tpu.memory_space<vmem>>, %arg15: memref<8x128xf32, #tpu.memory_space<vmem>>) attributes {dimension_semantics = [#tpu.dimension_semantics<parallel>], iteration_bounds = array<i64: 1>, scalar_prefetch = 0 : i64, scratch_operands = 0 : i64, tpu.core_type = #tpu.core_type<tc>, window_params = [{transform_indices = @transform_0, window_bounds = array<i64: 8, 8, 128>}, {transform_indices = @transform_1, window_bounds = array<i64: 8, 8, 1>}, {pipeline_mode = #tpu.pipeline_mode<synchronous>, transform_indices = @transform_2, window_bounds = array<i64: 128, 256>}, {pipeline_mode = #tpu.pipeline_mode<synchronous>, transform_indices = @transform_3, window_bounds = array<i64: 1, 256>}, {pipeline_mode = #tpu.pipeline_mode<synchronous>, transform_indices = @transform_4, window_bounds = array<i64: 128, 128>}, {pipeline_mode = #tpu.pipeline_mode<synchronous>, transform_indices = @transform_5, window_bounds = array<i64: 1, 128>}, {pipeline_mode = #tpu.pipeline_mode<synchronous>, transform_indices = @transform_6, window_bounds = array<i64: 128, 256>}, {pipeline_mode = #tpu.pipeline_mode<synchronous>, transform_indices = @transform_7, window_bounds = array<i64: 1, 256>}, {pipeline_mode = #tpu.pipeline_mode<synchronous>, transform_indices = @transform_8, window_bounds = array<i64: 256, 256>}, {pipeline_mode = #tpu.pipeline_mode<synchronous>, transform_indices = @transform_9, window_bounds = array<i64: 1, 256>}, {pipeline_mode = #tpu.pipeline_mode<synchronous>, transform_indices = @transform_10, window_bounds = array<i64: 256, 128>}, {pipeline_mode = #tpu.pipeline_mode<synchronous>, transform_indices = @transform_11, window_bounds = array<i64: 1, 128>}, {pipeline_mode = #tpu.pipeline_mode<synchronous>, transform_indices = @transform_12, window_bounds = array<i64: 128, 128>}, {pipeline_mode = #tpu.pipeline_mode<synchronous>, transform_indices = @transform_13, window_bounds = array<i64: 1, 128>}, {transform_indices = @transform_14, window_bounds = array<i64: 8, 128>}]} {
    %c0 = arith.constant 0 : index
    %c0_0 = arith.constant 0 : index
    %c0_1 = arith.constant 0 : index
    %0 = vector.load %arg1[%c0, %c0_0, %c0_1] : memref<8x8x128xf32, #tpu.memory_space<vmem>>, vector<8x8x128xf32>
    %1 = vector.shape_cast %0 : vector<8x8x128xf32> to vector<64x128xf32>
    %c0_2 = arith.constant 0 : index
    %c0_3 = arith.constant 0 : index
    %2 = vector.load %arg3[%c0_2, %c0_3] : memref<128x256xf32, #tpu.memory_space<vmem>>, vector<128x256xf32>
    %cst = arith.constant dense<0.000000e+00> : vector<64x256xf32>
    %3 = tpu.matmul %1, %2, %cst {dimension_numbers = #tpu.dot_dimension_numbers<[1], [0], [0], [1], [0, 0, 1, 1], [], []>} : vector<64x128xf32>, vector<128x256xf32>, vector<64x256xf32> -> vector<64x256xf32>
    %c0_4 = arith.constant 0 : index
    %c0_5 = arith.constant 0 : index
    %4 = vector.load %arg4[%c0_4, %c0_5] : memref<1x256xf32, #tpu.memory_space<vmem>>, vector<1x256xf32>
    %5 = vector.broadcast %4 : vector<1x256xf32> to vector<64x256xf32>
    %6 = arith.addf %3, %5 : vector<64x256xf32>
    %7 = vector.shape_cast %6 : vector<64x256xf32> to vector<8x8x256xf32>
    %8 = vector.extract_strided_slice %7 {offsets = [0, 0, 0], sizes = [8, 8, 128], strides = [1, 1, 1]} : vector<8x8x256xf32> to vector<8x8x128xf32>
    %c0_6 = arith.constant 0 : index
    %c0_7 = arith.constant 0 : index
    %c0_8 = arith.constant 0 : index
    %9 = vector.load %arg2[%c0_6, %c0_7, %c0_8] : memref<8x8x1xf32, #tpu.memory_space<vmem>>, vector<8x8x1xf32>
    %10 = vector.broadcast %9 : vector<8x8x1xf32> to vector<8x8x128xf32>
    %11 = arith.addf %8, %10 : vector<8x8x128xf32>
    %12 = vector.extract_strided_slice %7 {offsets = [0, 0, 128], sizes = [8, 8, 128], strides = [1, 1, 1]} : vector<8x8x256xf32> to vector<8x8x128xf32>
    %cst_9 = arith.constant dense<0xFF800000> : vector<8x128xf32>
    %13 = vector.multi_reduction <maximumf>, %11, %cst_9 [1] : vector<8x8x128xf32> to vector<8x128xf32>
    %14 = vector.shape_cast %13 : vector<8x128xf32> to vector<8x1x128xf32>
    %15 = vector.broadcast %14 : vector<8x1x128xf32> to vector<8x8x128xf32>
    %16 = arith.subf %11, %15 : vector<8x8x128xf32>
    %17 = math.exp %16 : vector<8x8x128xf32>
    %cst_10 = arith.constant dense<0.000000e+00> : vector<8x128xf32>
    %18 = vector.multi_reduction <add>, %17, %cst_10 [1] : vector<8x8x128xf32> to vector<8x128xf32>
    %19 = arith.mulf %17, %12 : vector<8x8x128xf32>
    %cst_11 = arith.constant dense<0.000000e+00> : vector<8x128xf32>
    %20 = vector.multi_reduction <add>, %19, %cst_11 [1] : vector<8x8x128xf32> to vector<8x128xf32>
    %21 = arith.divf %20, %18 : vector<8x128xf32>
    %c0_12 = arith.constant 0 : index
    %c0_13 = arith.constant 0 : index
    %22 = vector.load %arg5[%c0_12, %c0_13] : memref<128x128xf32, #tpu.memory_space<vmem>>, vector<128x128xf32>
    %cst_14 = arith.constant dense<0.000000e+00> : vector<8x128xf32>
    %23 = tpu.matmul %21, %22, %cst_14 {dimension_numbers = #tpu.dot_dimension_numbers<[1], [0], [0], [1], [0, 0, 1, 1], [], []>} : vector<8x128xf32>, vector<128x128xf32>, vector<8x128xf32> -> vector<8x128xf32>
    %c0_15 = arith.constant 0 : index
    %c0_16 = arith.constant 0 : index
    %24 = vector.load %arg6[%c0_15, %c0_16] : memref<1x128xf32, #tpu.memory_space<vmem>>, vector<1x128xf32>
    %25 = vector.broadcast %24 : vector<1x128xf32> to vector<8x128xf32>
    %26 = arith.addf %23, %25 : vector<8x128xf32>
    %cst_17 = arith.constant 5.000000e-01 : f32
    %27 = vector.broadcast %cst_17 : f32 to vector<8x128xf32>
    %28 = arith.mulf %27, %26 : vector<8x128xf32>
    %cst_18 = arith.constant 1.41421354 : f32
    %29 = vector.broadcast %cst_18 : f32 to vector<8x128xf32>
    %30 = arith.divf %26, %29 : vector<8x128xf32>
    %31 = math.erf %30 : vector<8x128xf32>
    %cst_19 = arith.constant 1.000000e+00 : f32
    %32 = vector.broadcast %cst_19 : f32 to vector<8x128xf32>
    %33 = arith.addf %32, %31 : vector<8x128xf32>
    %34 = arith.mulf %28, %33 : vector<8x128xf32>
    %c0_20 = arith.constant 0 : index
    %c0_21 = arith.constant 0 : index
    %35 = vector.load %arg7[%c0_20, %c0_21] : memref<128x256xf32, #tpu.memory_space<vmem>>, vector<128x256xf32>
    %cst_22 = arith.constant dense<0.000000e+00> : vector<8x256xf32>
    %36 = tpu.matmul %34, %35, %cst_22 {dimension_numbers = #tpu.dot_dimension_numbers<[1], [0], [0], [1], [0, 0, 1, 1], [], []>} : vector<8x128xf32>, vector<128x256xf32>, vector<8x256xf32> -> vector<8x256xf32>
    %c0_23 = arith.constant 0 : index
    %c0_24 = arith.constant 0 : index
    %37 = vector.load %arg8[%c0_23, %c0_24] : memref<1x256xf32, #tpu.memory_space<vmem>>, vector<1x256xf32>
    %38 = vector.broadcast %37 : vector<1x256xf32> to vector<8x256xf32>
    %39 = arith.addf %36, %38 : vector<8x256xf32>
    %cst_25 = arith.constant 5.000000e-01 : f32
    %40 = vector.broadcast %cst_25 : f32 to vector<8x256xf32>
    %41 = arith.mulf %40, %39 : vector<8x256xf32>
    %cst_26 = arith.constant 1.41421354 : f32
    %42 = vector.broadcast %cst_26 : f32 to vector<8x256xf32>
    %43 = arith.divf %39, %42 : vector<8x256xf32>
    %44 = math.erf %43 : vector<8x256xf32>
    %cst_27 = arith.constant 1.000000e+00 : f32
    %45 = vector.broadcast %cst_27 : f32 to vector<8x256xf32>
    %46 = arith.addf %45, %44 : vector<8x256xf32>
    %47 = arith.mulf %41, %46 : vector<8x256xf32>
    %c0_28 = arith.constant 0 : index
    %c0_29 = arith.constant 0 : index
    %48 = vector.load %arg9[%c0_28, %c0_29] : memref<256x256xf32, #tpu.memory_space<vmem>>, vector<256x256xf32>
    %cst_30 = arith.constant dense<0.000000e+00> : vector<8x256xf32>
    %49 = tpu.matmul %47, %48, %cst_30 {dimension_numbers = #tpu.dot_dimension_numbers<[1], [0], [0], [1], [0, 0, 1, 1], [], []>} : vector<8x256xf32>, vector<256x256xf32>, vector<8x256xf32> -> vector<8x256xf32>
    %c0_31 = arith.constant 0 : index
    %c0_32 = arith.constant 0 : index
    %50 = vector.load %arg10[%c0_31, %c0_32] : memref<1x256xf32, #tpu.memory_space<vmem>>, vector<1x256xf32>
    %51 = vector.broadcast %50 : vector<1x256xf32> to vector<8x256xf32>
    %52 = arith.addf %49, %51 : vector<8x256xf32>
    %cst_33 = arith.constant 5.000000e-01 : f32
    %53 = vector.broadcast %cst_33 : f32 to vector<8x256xf32>
    %54 = arith.mulf %53, %52 : vector<8x256xf32>
    %cst_34 = arith.constant 1.41421354 : f32
    %55 = vector.broadcast %cst_34 : f32 to vector<8x256xf32>
    %56 = arith.divf %52, %55 : vector<8x256xf32>
    %57 = math.erf %56 : vector<8x256xf32>
    %cst_35 = arith.constant 1.000000e+00 : f32
    %58 = vector.broadcast %cst_35 : f32 to vector<8x256xf32>
    %59 = arith.addf %58, %57 : vector<8x256xf32>
    %60 = arith.mulf %54, %59 : vector<8x256xf32>
    %c0_36 = arith.constant 0 : index
    %c0_37 = arith.constant 0 : index
    %61 = vector.load %arg11[%c0_36, %c0_37] : memref<256x128xf32, #tpu.memory_space<vmem>>, vector<256x128xf32>
    %cst_38 = arith.constant dense<0.000000e+00> : vector<8x128xf32>
    %62 = tpu.matmul %60, %61, %cst_38 {dimension_numbers = #tpu.dot_dimension_numbers<[1], [0], [0], [1], [0, 0, 1, 1], [], []>} : vector<8x256xf32>, vector<256x128xf32>, vector<8x128xf32> -> vector<8x128xf32>
    %c0_39 = arith.constant 0 : index
    %c0_40 = arith.constant 0 : index
    %63 = vector.load %arg12[%c0_39, %c0_40] : memref<1x128xf32, #tpu.memory_space<vmem>>, vector<1x128xf32>
    %64 = vector.broadcast %63 : vector<1x128xf32> to vector<8x128xf32>
    %65 = arith.addf %62, %64 : vector<8x128xf32>
    %cst_41 = arith.constant 5.000000e-01 : f32
    %66 = vector.broadcast %cst_41 : f32 to vector<8x128xf32>
    %67 = arith.mulf %66, %65 : vector<8x128xf32>
    %cst_42 = arith.constant 1.41421354 : f32
    %68 = vector.broadcast %cst_42 : f32 to vector<8x128xf32>
    %69 = arith.divf %65, %68 : vector<8x128xf32>
    %70 = math.erf %69 : vector<8x128xf32>
    %cst_43 = arith.constant 1.000000e+00 : f32
    %71 = vector.broadcast %cst_43 : f32 to vector<8x128xf32>
    %72 = arith.addf %71, %70 : vector<8x128xf32>
    %73 = arith.mulf %67, %72 : vector<8x128xf32>
    %c0_44 = arith.constant 0 : index
    %c0_45 = arith.constant 0 : index
    %74 = vector.load %arg13[%c0_44, %c0_45] : memref<128x128xf32, #tpu.memory_space<vmem>>, vector<128x128xf32>
    %cst_46 = arith.constant dense<0.000000e+00> : vector<8x128xf32>
    %75 = tpu.matmul %73, %74, %cst_46 {dimension_numbers = #tpu.dot_dimension_numbers<[1], [0], [0], [1], [0, 0, 1, 1], [], []>} : vector<8x128xf32>, vector<128x128xf32>, vector<8x128xf32> -> vector<8x128xf32>
    %c0_47 = arith.constant 0 : index
    %c0_48 = arith.constant 0 : index
    %76 = vector.load %arg14[%c0_47, %c0_48] : memref<1x128xf32, #tpu.memory_space<vmem>>, vector<1x128xf32>
    %77 = vector.broadcast %76 : vector<1x128xf32> to vector<8x128xf32>
    %78 = arith.addf %75, %77 : vector<8x128xf32>
    %c0_49 = arith.constant 0 : index
    %c0_50 = arith.constant 0 : index
    %79 = vector.load %arg15[%c0_49, %c0_50] : memref<8x128xf32, #tpu.memory_space<vmem>>, vector<8x128xf32>
    tpu.vector_store %arg15[%c0_49, %c0_50], %78 {strides = array<i32>} : memref<8x128xf32, #tpu.memory_space<vmem>>, vector<8x128xf32>,
    return
  }
  func.func @transform_0(%arg0: i32) -> (i32, i32, i32) {
    %c0_i32 = arith.constant 0 : i32
    %c0_i32_0 = arith.constant 0 : i32
    %c0_i32_1 = arith.constant 0 : i32
    return %arg0, %c0_i32, %c0_i32_0 : i32, i32, i32
  }
  func.func @transform_1(%arg0: i32) -> (i32, i32, i32) {
    %c0_i32 = arith.constant 0 : i32
    %c0_i32_0 = arith.constant 0 : i32
    %c0_i32_1 = arith.constant 0 : i32
    return %arg0, %c0_i32, %c0_i32_0 : i32, i32, i32
  }
  func.func @transform_2(%arg0: i32) -> (i32, i32) {
    %c0_i32 = arith.constant 0 : i32
    %c0_i32_0 = arith.constant 0 : i32
    %c0_i32_1 = arith.constant 0 : i32
    return %c0_i32, %c0_i32_0 : i32, i32
  }
  func.func @transform_3(%arg0: i32) -> (i32, i32) {
    %c0_i32 = arith.constant 0 : i32
    %c0_i32_0 = arith.constant 0 : i32
    %c0_i32_1 = arith.constant 0 : i32
    return %c0_i32, %c0_i32_0 : i32, i32
  }
  func.func @transform_4(%arg0: i32) -> (i32, i32) {
    %c0_i32 = arith.constant 0 : i32
    %c0_i32_0 = arith.constant 0 : i32
    %c0_i32_1 = arith.constant 0 : i32
    return %c0_i32, %c0_i32_0 : i32, i32
  }
  func.func @transform_5(%arg0: i32) -> (i32, i32) {
    %c0_i32 = arith.constant 0 : i32
    %c0_i32_0 = arith.constant 0 : i32
    %c0_i32_1 = arith.constant 0 : i32
    return %c0_i32, %c0_i32_0 : i32, i32
  }
  func.func @transform_6(%arg0: i32) -> (i32, i32) {
    %c0_i32 = arith.constant 0 : i32
    %c0_i32_0 = arith.constant 0 : i32
    %c0_i32_1 = arith.constant 0 : i32
    return %c0_i32, %c0_i32_0 : i32, i32
  }
  func.func @transform_7(%arg0: i32) -> (i32, i32) {
    %c0_i32 = arith.constant 0 : i32
    %c0_i32_0 = arith.constant 0 : i32
    %c0_i32_1 = arith.constant 0 : i32
    return %c0_i32, %c0_i32_0 : i32, i32
  }
  func.func @transform_8(%arg0: i32) -> (i32, i32) {
    %c0_i32 = arith.constant 0 : i32
    %c0_i32_0 = arith.constant 0 : i32
    %c0_i32_1 = arith.constant 0 : i32
    return %c0_i32, %c0_i32_0 : i32, i32
  }
  func.func @transform_9(%arg0: i32) -> (i32, i32) {
    %c0_i32 = arith.constant 0 : i32
    %c0_i32_0 = arith.constant 0 : i32
    %c0_i32_1 = arith.constant 0 : i32
    return %c0_i32, %c0_i32_0 : i32, i32
  }
  func.func @transform_10(%arg0: i32) -> (i32, i32) {
    %c0_i32 = arith.constant 0 : i32
    %c0_i32_0 = arith.constant 0 : i32
    %c0_i32_1 = arith.constant 0 : i32
    return %c0_i32, %c0_i32_0 : i32, i32
  }
  func.func @transform_11(%arg0: i32) -> (i32, i32) {
    %c0_i32 = arith.constant 0 : i32
    %c0_i32_0 = arith.constant 0 : i32
    %c0_i32_1 = arith.constant 0 : i32
    return %c0_i32, %c0_i32_0 : i32, i32
  }
  func.func @transform_12(%arg0: i32) -> (i32, i32) {
    %c0_i32 = arith.constant 0 : i32
    %c0_i32_0 = arith.constant 0 : i32
    %c0_i32_1 = arith.constant 0 : i32
    return %c0_i32, %c0_i32_0 : i32, i32
  }
  func.func @transform_13(%arg0: i32) -> (i32, i32) {
    %c0_i32 = arith.constant 0 : i32
    %c0_i32_0 = arith.constant 0 : i32
    %c0_i32_1 = arith.constant 0 : i32
    return %c0_i32, %c0_i32_0 : i32, i32
  }
  func.func @transform_14(%arg0: i32) -> (i32, i32) {
    %c0_i32 = arith.constant 0 : i32
    %c0_i32_0 = arith.constant 0 : i32
    return %arg0, %c0_i32 : i32, i32
  }
}

</mosaic_0001>

<bundles_post_ra>
// kernel: tpu_custom_call.1
= control target key start
LH: loop header
LB: loop body
LE: loop exit
PB: predicated region body
PF: predicated region fallthrough
CT: control target
= control target key end

     0   :  { %19 = vsyncpa [#allocation3], 0  ;;  %s2123_s0 = inlined_call_operand.vmem [shape: f32[8,8,128], index: 0, kind: input, shape index: {}]   ;;  %s2124_s1 = inlined_call_operand.vmem [shape: f32[8,8,1], index: 1, kind: input, shape index: {}]   ;;  %s2125_s2 = inlined_call_operand.hbm [shape: f32[128,256], index: 2, kind: input, shape index: {}]   ;;  %s2126_s3 = inlined_call_operand.vmem [shape: f32[1,256], index: 3, kind: input, shape index: {}]   ;;  %s2127_s4 = inlined_call_operand.hbm [shape: f32[128,128], index: 4, kind: input, shape index: {}]   ;;  %s2128_s5 = inlined_call_operand.vmem [shape: f32[1,128], index: 5, kind: input, shape index: {}]   ;;  %s2129_s6 = inlined_call_operand.hbm [shape: f32[128,256], index: 6, kind: input, shape index: {}]   ;;  %s2130_s7 = inlined_call_operand.vmem [shape: f32[1,256], index: 7, kind: input, shape index: {}]   ;;  %s2131_s8 = inlined_call_operand.hbm [shape: f32[256,256], index: 8, kind: input, shape index: {}]   ;;  %s2132_s9 = inlined_call_operand.vmem [shape: f32[1,256], index: 9, kind: input, shape index: {}]   ;;  %s2133_s10 = inlined_call_operand.hbm [shape: f32[256,128], index: 10, kind: input, shape index: {}]   ;;  %s2134_s11 = inlined_call_operand.vmem [shape: f32[1,128], index: 11, kind: input, shape index: {}]   ;;  %s2135_s12 = inlined_call_operand.hbm [shape: f32[128,128], index: 12, kind: input, shape index: {}]   ;;  %s2136_s13 = inlined_call_operand.vmem [shape: f32[1,128], index: 13, kind: input, shape index: {}]   ;;  %s2137_s14 = inlined_call_operand.hbm [shape: f32[8,128], index: 14, kind: output, shape index: {}]  }
   0x1   :  { %20 = vsyncpa [#allocation6], 0 }
   0x2   :  { %21 = vsyncpa [#allocation9], 0 }
   0x3   :  { %22 = vsyncpa [#allocation12], 0  ;;  %s47_s15 = sshll.u32 %s2127_s4, 4  ;;  %s48_s15 = int_to_ptr.hbm [resolvable:$true] %s47_s15 }
   0x4   :  { %23 = vsyncpa [#allocation4], 0  ;;  %s1570_s16 = smov [#allocation5]   ;;  %s1571_s18 = smov 128  }
   0x5   :  { %s49_s17 = sshll.u32 %s1570_s16, 4  ;;  %s1572_s19 = smov 8   ;;  %s50_s17 = int_to_ptr.vmem [resolvable:$true] %s49_s17 }
   0x6   :  { %55 = dma.hbm_to_vmem [thread:$0]  %s48_s15, 2048, %s50_s17, [#allocation6], %s1571_s18, %s1571_s18, %s1572_s19  }
   0x7   :  { %s77_s22 = sshll.u32 %s2131_s8, 4  ;;  %s1573_s23 = smov [#allocation8]   ;;  %s78_s22 = int_to_ptr.hbm [resolvable:$true] %s77_s22 }
   0x8   :  { %s79_s24 = sshll.u32 %s1573_s23, 4  ;;  %s32_s26 = sshll.u32 %s2125_s2, 4  ;;  %s80_s24 = int_to_ptr.vmem [resolvable:$true] %s79_s24  ;;  %s33_s26 = int_to_ptr.hbm [resolvable:$true] %s32_s26 }
   0x9   :  { %s1574_s27 = smov 256   ;;  %s1575_s28 = smov 16  }
   0xa   :  { %85 = dma.hbm_to_vmem [thread:$0]  %s78_s22, 8192, %s80_s24, [#allocation9], %s1574_s27, %s1574_s27, %s1575_s28  }
   0xb   :  { %s62_s15 = sshll.u32 %s2129_s6, 4  ;;  %s1576_s16 = smov [#allocation2]   ;;  %s63_s15 = int_to_ptr.hbm [resolvable:$true] %s62_s15 }
   0xc   :  { %s34_s17 = sshll.u32 %s1576_s16, 4  ;;  %s1577_s8 = smov [#allocation7]   ;;  %s35_s17 = int_to_ptr.vmem [resolvable:$true] %s34_s17 }
   0xd   :  { %40 = dma.hbm_to_vmem [thread:$0]  %s33_s26, 4096, %s35_s17, [#allocation3], %s1574_s27, %s1574_s27, %s1575_s28  }
   0xe   :  { %s64_s20 = sshll.u32 %s1577_s8, 4  ;;  %s92_s2 = sshll.u32 %s2133_s10, 4  ;;  %s65_s20 = int_to_ptr.vmem [resolvable:$true] %s64_s20  ;;  %s93_s2 = int_to_ptr.hbm [resolvable:$true] %s92_s2 }
   0xf   :  { %70 = dma.hbm_to_vmem [thread:$0]  %s63_s15, 4096, %s65_s20, [#allocation6], %s1574_s27, %s1574_s27, %s1575_s28  }
  0x10   :  { %s107_s24 = sshll.u32 %s2135_s12, 4  ;;  %s1578_s4 = smov [#allocation10]   ;;  %s108_s24 = int_to_ptr.hbm [resolvable:$true] %s107_s24 }
  0x11   :  { %s94_s6 = sshll.u32 %s1578_s4, 4  ;;  %s1579_s26 = smov [#allocation11]   ;;  %s95_s6 = int_to_ptr.vmem [resolvable:$true] %s94_s6 }
  0x12   :  { %100 = dma.hbm_to_vmem [thread:$0]  %s93_s2, 4096, %s95_s6, [#allocation9], %s1571_s18, %s1571_s18, %s1572_s19  }
  0x13   :  { %s109_s29 = sshll.u32 %s1579_s26, 4  ;;  %s110_s29 = int_to_ptr.vmem [resolvable:$true] %s109_s29 }
  0x14   :  { %115 = dma.hbm_to_vmem [thread:$0]  %s108_s24, 2048, %s110_s29, [#allocation12], %s1571_s18, %s1571_s18, %s1572_s19  }
  0x15   :  { %1560 = dma.done.wait [#allocation3], 4096  }
  0x16   :  { %1561 = vsyncadd [#allocation3], 4294963200 }
  0x17   :  { %1562 = dma.done.wait [#allocation6], 6144  }
  0x18   :  { %1563 = vsyncadd [#allocation6], 4294961152 }
  0x19   :  { %1564 = dma.done.wait [#allocation9], 12288  }
  0x1a   :  { %1565 = vsyncadd [#allocation9], 4294955008 }
  0x1b   :  { %1566 = dma.done.wait [#allocation12], 2048  }
  0x1c   :  { %1567 = vsyncadd [#allocation12], 4294965248  ;;  %v180_v0 = vld [vmem:[#allocation2 + $0xf0] sm:$0xff]  ;;  %v178_v1 = vld [vmem:[#allocation2 + $0xe0] sm:$0xff]  ;;  %v1580_v13 = vmov 0   ;;  %s1582_s25 = smov [#allocation13]  }
  0x1d   :  { %188 = vmatpush.msra.mxu0 %v180_v0  ;;  %v176_v2 = vld [vmem:[#allocation2 + $0xd0] sm:$0xff]  ;;  %v174_v3 = vld [vmem:[#allocation2 + $0xc0] sm:$0xff]  ;;  %v181_v4 = vld [vmem:[#allocation2 + $0xf8] sm:$0xff]  ;;  %1340 = vset.pattern.permute.xlu0 %v1580_v13  ;;  %s1306_s22 = sshll.u32 %s1582_s25, 4  ;;  %s1308_s6 = sshll.u32 %s2137_s14, 4  ;;  %s1307_s22 = int_to_ptr.vmem [resolvable:$true] %s1306_s22  ;;  %s1309_s6 = int_to_ptr.hbm [resolvable:$true] %s1308_s6 }
  0x1e   :  { %229 = vmatpush.msra.mxu1 %v181_v4  ;;  %v179_v5 = vld [vmem:[#allocation2 + $0xe8] sm:$0xff]  ;;  %v172_v6 = vld [vmem:[#allocation2 + $0xb0] sm:$0xff]  ;;  %v177_v7 = vld [vmem:[#allocation2 + $0xd8] sm:$0xff]  ;;  %1341 = vset.pattern.permute.xlu1 %v1580_v13 }
  0x1f   :  { %189 = vmatpush.msra.mxu0 %v178_v1  ;;  %v170_v8 = vld [vmem:[#allocation2 + $0xa0] sm:$0xff]  ;;  %v175_v9 = vld [vmem:[#allocation2 + $0xc8] sm:$0xff]  ;;  %v168_v10 = vld [vmem:[#allocation2 + $0x90] sm:$0xff]  ;;  %1342 = vset.pattern.permute.xlu2 %v1580_v13 }
  0x20   :  { %230 = vmatpush.msra.mxu1 %v179_v5  ;;  %v270_v11 = vld [vmem:[%s2124_s1] sm:$0xff]  ;;  %v173_v12 = vld [vmem:[#allocation2 + $0xb8] sm:$0xff]  ;;  %v171_v15 = vld [vmem:[#allocation2 + $0xa8] sm:$0xff] }
  0x21   :  { %190 = vmatpush.msra.mxu0 %v176_v2  ;;  %v166_v14 = vld [vmem:[#allocation2 + $0x80] sm:$0xff]  ;;  %280 = vperm.xlu0 %1340, %v270_v11   ;;  %v164_v16 = vld [vmem:[#allocation2 + $0x70] sm:$0xff]  ;;  %v169_v17 = vld [vmem:[#allocation2 + $0x98] sm:$0xff] }
  0x22   :  { %231 = vmatpush.msra.mxu1 %v177_v7  ;;  %v162_v18 = vld [vmem:[#allocation2 + $0x60] sm:$0xff]  ;;  %v167_v19 = vld [vmem:[#allocation2 + $0x88] sm:$0xff]  ;;  %v160_v21 = vld [vmem:[#allocation2 + $0x50] sm:$0xff] }
  0x23   :  { %191 = vmatpush.msra.mxu0 %v174_v3  ;;  %v271_v20 = vld [vmem:[%s2124_s1 + $0x8] sm:$0xff]  ;;  %v165_v22 = vld [vmem:[#allocation2 + $0x78] sm:$0xff]  ;;  %v158_v23 = vld [vmem:[#allocation2 + $0x40] sm:$0xff] }
  0x24   :  { %232 = vmatpush.msra.mxu1 %v175_v9  ;;  %v163_v24 = vld [vmem:[#allocation2 + $0x68] sm:$0xff]  ;;  %v156_v25 = vld [vmem:[#allocation2 + $0x30] sm:$0xff]  ;;  %v161_v26 = vld [vmem:[#allocation2 + $0x58] sm:$0xff] }
  0x25   :  { %192 = vmatpush.msra.mxu0 %v172_v6  ;;  %v154_v27 = vld [vmem:[#allocation2 + $0x20] sm:$0xff]  ;;  %v159_v28 = vld [vmem:[#allocation2 + $0x48] sm:$0xff]  ;;  %v272_v29 = vld [vmem:[%s2124_s1 + $0x10] sm:$0xff] }
  0x26   :  { %233 = vmatpush.msra.mxu1 %v173_v12  ;;  %v152_v30 = vld [vmem:[#allocation2 + $0x10] sm:$0xff]  ;;  %v157_v31 = vld [vmem:[#allocation2 + $0x38] sm:$0xff]  ;;  %290 = vperm.xlu1 %1341, %v272_v29   ;;  %v150_v32 = vld [vmem:[#allocation2] sm:$0xff] }
  0x27   :  { %193 = vmatpush.msra.mxu0 %v170_v8  ;;  %v155_v33 = vld [vmem:[#allocation2 + $0x28] sm:$0xff]  ;;  %v142_v34 = vld [vmem:[%s2123_s0] sm:$0xff]  ;;  %v153_v35 = vld [vmem:[#allocation2 + $0x18] sm:$0xff] }
  0x28   :  { %234 = vmatpush.msra.mxu1 %v171_v15  ;;  %v151_v36 = vld [vmem:[#allocation2 + $0x8] sm:$0xff]  ;;  %v273_v37 = vld [vmem:[%s2124_s1 + $0x18] sm:$0xff]  ;;  %v144_v39 = vld [vmem:[%s2123_s0 + $0x10] sm:$0xff] }
  0x29   :  { %194 = vmatpush.msra.mxu0 %v168_v10  ;;  %285 = vperm.xlu0 %1340, %v271_v20   ;;  %v143_v38 = vld [vmem:[%s2123_s0 + $0x8] sm:$0xff]  ;;  %v276_v40 = vld [vmem:[%s2124_s1 + $0x30] sm:$0xff]  ;;  %v277_v41 = vld [vmem:[%s2124_s1 + $0x38] sm:$0xff] }
  0x2a   :  { %235 = vmatpush.msra.mxu1 %v169_v17  ;;  %v145_v42 = vld [vmem:[%s2123_s0 + $0x18] sm:$0xff]  ;;  %v274_v43 = vld [vmem:[%s2124_s1 + $0x20] sm:$0xff]  ;;  %v275_v45 = vld [vmem:[%s2124_s1 + $0x28] sm:$0xff] }
  0x2b   :  { %195 = vmatpush.msra.mxu0 %v166_v14  ;;  %300 = vperm.xlu2 %1342, %v274_v43   ;;  %v146_v44 = vld [vmem:[%s2123_s0 + $0x20] sm:$0xff]  ;;  %v147_v46 = vld [vmem:[%s2123_s0 + $0x28] sm:$0xff]  ;;  %v148_v47 = vld [vmem:[%s2123_s0 + $0x30] sm:$0xff] }
  0x2c   :  { %236 = vmatpush.msra.mxu1 %v167_v19  ;;  %v149_v48 = vld [vmem:[%s2123_s0 + $0x38] sm:$0xff]  ;;  %v1736_v49 = vld [vmem:[%s2126_s3] sm:$0x3] }
  0x2d   :  { %196 = vmatpush.msra.mxu0 %v164_v16  ;;  %v1739_v50 = vperm.slane %v1736_v49, 0 }
  0x2e   :  { %237 = vmatpush.msra.mxu1 %v165_v22  ;;  %295 = vperm.xlu1 %1341, %v273_v37  }
  0x2f   :  { %197 = vmatpush.msra.mxu0 %v162_v18 }
  0x30   :  { %238 = vmatpush.msra.mxu1 %v163_v24 }
  0x31   :  { %198 = vmatpush.msra.mxu0 %v160_v21  ;;  %310 = vperm.xlu0 %1340, %v276_v40  }
  0x32   :  { %239 = vmatpush.msra.mxu1 %v161_v26 }
  0x33   :  { %199 = vmatpush.msra.mxu0 %v158_v23  ;;  %305 = vperm.xlu2 %1342, %v275_v45  }
  0x34   :  { %240 = vmatpush.msra.mxu1 %v159_v28 }
  0x35   :  { %200 = vmatpush.msra.mxu0 %v156_v25 }
  0x36   :  { %241 = vmatpush.msra.mxu1 %v157_v31  ;;  %315 = vperm.xlu1 %1341, %v277_v41  }
  0x37   :  { %201 = vmatpush.msra.mxu0 %v154_v27 }
  0x38   :  { %242 = vmatpush.msra.mxu1 %v155_v33 }
  0x39   :  { %202 = vmatpush.msra.mxu0 %v152_v30 }
  0x3a   :  { %243 = vmatpush.msra.mxu1 %v153_v35 }
  0x3b   :  { %203 = vmatpush.msra.mxu0 %v150_v32 }
  0x3c   :  { %204 = vmatmul.f32.vlgmr.msra.gmra.mxu0 %v142_v34  ;;  %244 = vmatpush.msra.mxu1 %v151_v36 }
  0x3d   :  { %245 = vmatmul.f32.vlgmr.msra.gmra.mxu1 %v142_v34 }
  0x44   :  { %207 = vmatmul.f32.gmra.mxu0 %v143_v38 }
  0x45   :  { %248 = vmatmul.f32.gmra.mxu1 %v143_v38 }
  0x4c   :  { %210 = vmatmul.f32.gmra.mxu0 %v144_v39 }
  0x4d   :  { %251 = vmatmul.f32.gmra.mxu1 %v144_v39 }
  0x54   :  { %213 = vmatmul.f32.gmra.mxu0 %v145_v42 }
  0x55   :  { %254 = vmatmul.f32.gmra.mxu1 %v145_v42 }
  0x5c   :  { %216 = vmatmul.f32.gmra.mxu0 %v146_v44 }
  0x5d   :  { %257 = vmatmul.f32.gmra.mxu1 %v146_v44 }
  0x64   :  { %219 = vmatmul.f32.gmra.mxu0 %v147_v46 }
  0x65   :  { %260 = vmatmul.f32.gmra.mxu1 %v147_v46 }
  0x6c   :  { %222 = vmatmul.f32.gmra.mxu0 %v148_v47 }
  0x6d   :  { %263 = vmatmul.f32.gmra.mxu1 %v148_v47 }
  0x74   :  { %225 = vmatmul.f32.gmra.mxu0 %v149_v48 }
  0x75   :  { %266 = vmatmul.f32.gmra.mxu1 %v149_v48 }
  0x85   :  { %v301_v32 = vpop.permute.xlu2 %300 }
  0x93   :  { %v281_v51 = vpop.permute.xlu0 %280 }
  0x98   :  { %v291_v1 = vpop.permute.xlu1 %290 }
  0x9b   :  { %v286_v58 = vpop.permute.xlu0 %285 }
  0xa0   :  { %v296_v17 = vpop.permute.xlu1 %295 }
  0xb9   :  { %v205_v52 = vpop.f32.mrf.mxu0 }
  0xba   :  { %v206_v53 = vadd.f32 %v205_v52, %v1739_v50  ;;  %v1743_v5 = vpop.f32.mrf.mxu1 }
  0xbc   :  { %v318_v54 = vadd.f32 %v281_v51, %v206_v53 }
  0xbe   :  { %v326_v55 = vrot.slane %v318_v54, 4 }
  0xc0   :  { %v327_v56 = vmax.f32 %v318_v54, %v326_v55  ;;  %v306_v55 = vpop.permute.xlu2 %305 }
  0xc1   :  { %v208_v57 = vpop.f32.mrf.mxu0 }
  0xc2   :  { %v328_v59 = vrot.slane %v327_v56, 2  ;;  %v209_v60 = vadd.f32 %v208_v57, %v1739_v50  ;;  %v1747_v21 = vpop.f32.mrf.mxu1 }
  0xc4   :  { %v329_v61 = vmax.f32 %v327_v56, %v328_v59  ;;  %v319_v62 = vadd.f32 %v286_v58, %v209_v60  ;;  %v1752_v58 = vperm.slane %v1736_v49, 1 }
  0xc6   :  { %v330_v63 = vrot.slane %v329_v61, 1  ;;  %v332_v0 = vrot.slane %v319_v62, 4 }
  0xc8   :  { %v331_v2 = vmax.f32 %v329_v61, %v330_v63  ;;  %v333_v3 = vmax.f32 %v319_v62, %v332_v0 }
  0xc9   :  { %v211_v4 = vpop.f32.mrf.mxu0 }
  0xca   :  { %v374_v6 = vsub.f32 %v318_v54, %v331_v2  ;;  %v334_v7 = vrot.slane %v333_v3, 2  ;;  %v212_v8 = vadd.f32 %v211_v4, %v1739_v50  ;;  %v252_v41 = vpop.f32.mrf.mxu1 }
  0xcc   :  { %v382_v9 = vmul.f32 1.442695, %v374_v6  ;;  %v335_v10 = vmax.f32 %v333_v3, %v334_v7  ;;  %v320_v11 = vadd.f32 %v291_v1, %v212_v8  ;;  %v247_v3 = vadd.f32 %v1743_v5, %v1752_v58 }
  0xcd   :  { %v250_v5 = vadd.f32 %v1747_v21, %v1752_v58 }
  0xce   :  { %1346 = vpow2.f32 %v382_v9  ;;  %v336_v12 = vrot.slane %v335_v10, 1  ;;  %v338_v13 = vrot.slane %v320_v11, 4 }
  0xd0   :  { %v337_v14 = vmax.f32 %v335_v10, %v336_v12  ;;  %v339_v15 = vmax.f32 %v320_v11, %v338_v13 }
  0xd1   :  { %v214_v16 = vpop.f32.mrf.mxu0 }
  0xd2   :  { %v375_v18 = vsub.f32 %v319_v62, %v337_v14  ;;  %v340_v19 = vrot.slane %v339_v15, 2  ;;  %v215_v20 = vadd.f32 %v214_v16, %v1739_v50  ;;  %v1754_v1 = vpop.f32.mrf.mxu1 }
  0xd4   :  { %v1347_v22 = vpop.eup %1346  ;;  %v384_v23 = vmul.f32 1.442695, %v375_v18  ;;  %v341_v24 = vmax.f32 %v339_v15, %v340_v19  ;;  %v321_v25 = vadd.f32 %v296_v17, %v215_v20  ;;  %v311_v20 = vpop.permute.xlu0 %310 }
  0xd5   :  { %v398_v26 = vrot.slane %v1347_v22, 4  ;;  %v446_v12 = vmul.f32 %v1347_v22, %v247_v3 }
  0xd6   :  { %v342_v27 = vrot.slane %v341_v24, 1  ;;  %v344_v28 = vrot.slane %v321_v25, 4  ;;  %1348 = vpow2.f32 %v384_v23 }
  0xd7   :  { %v399_v33 = vadd.f32 %v1347_v22, %v398_v26 }
  0xd8   :  { %v343_v29 = vmax.f32 %v341_v24, %v342_v27  ;;  %v345_v30 = vmax.f32 %v321_v25, %v344_v28 }
  0xd9   :  { %v217_v31 = vpop.f32.mrf.mxu0  ;;  %v400_v42 = vrot.slane %v399_v33, 2 }
  0xda   :  { %v376_v34 = vsub.f32 %v320_v11, %v343_v29  ;;  %v346_v35 = vrot.slane %v345_v30, 2  ;;  %v218_v36 = vadd.f32 %v217_v31, %v1739_v50  ;;  %v258_v27 = vpop.f32.mrf.mxu1  ;;  %v253_v29 = vadd.f32 %v252_v41, %v1752_v58 }
  0xdb   :  { %v401_v51 = vadd.f32 %v400_v42, %v399_v33 }
  0xdc   :  { %v386_v37 = vmul.f32 1.442695, %v376_v34  ;;  %v347_v38 = vmax.f32 %v345_v30, %v346_v35  ;;  %v322_v39 = vadd.f32 %v301_v32, %v218_v36  ;;  %v1349_v40 = vpop.eup %1348 }
  0xdd   :  { %v404_v45 = vrot.slane %v1349_v40, 4  ;;  %v402_v62 = vrot.slane %v401_v51, 1  ;;  %v447_v28 = vmul.f32 %v1349_v40, %v250_v5  ;;  %v632_v5 = vld [vmem:[#allocation5 + $0x50] sm:$0xff] }
  0xde   :  { %1350 = vpow2.f32 %v386_v37  ;;  %v348_v43 = vrot.slane %v347_v38, 1  ;;  %v350_v44 = vrot.slane %v322_v39, 4 }
  0xdf   :  { %v405_v57 = vadd.f32 %v1349_v40, %v404_v45  ;;  %v1758_v8 = vadd.f32 %v402_v62, %v401_v51  ;;  %v460_v42 = vrot.slane %v447_v28, 4  ;;  %v316_v51 = vpop.permute.xlu1 %315 }
  0xe0   :  { %v349_v46 = vmax.f32 %v347_v38, %v348_v43  ;;  %v351_v47 = vmax.f32 %v322_v39, %v350_v44 }
  0xe1   :  { %v220_v48 = vpop.f32.mrf.mxu0  ;;  %v406_v2 = vrot.slane %v405_v57, 2  ;;  %vm507_vm1 = vweird.f32 %v1758_v8 }
  0xe2   :  { %v377_v52 = vsub.f32 %v321_v25, %v349_v46  ;;  %v352_v53 = vrot.slane %v351_v47, 2  ;;  %v221_v54 = vadd.f32 %v220_v48, %v1739_v50  ;;  %v454_v25 = vrot.slane %v446_v12, 4 }
  0xe3   :  { %v407_v11 = vadd.f32 %v406_v2, %v405_v57  ;;  %v461_v57 = vadd.f32 %v460_v42, %v447_v28 }
  0xe4   :  { %v1351_v56 = vpop.eup %1350  ;;  %v388_v59 = vmul.f32 1.442695, %v377_v52  ;;  %v353_v61 = vmax.f32 %v351_v47, %v352_v53  ;;  %v323_v63 = vadd.f32 %v306_v55, %v221_v54  ;;  %v455_v34 = vadd.f32 %v454_v25, %v446_v12  ;;  %v637_v47 = vld [vmem:[#allocation5 + $0x78] sm:$0xff] }
  0xe5   :  { %v410_v60 = vrot.slane %v1351_v56, 4  ;;  %v408_v24 = vrot.slane %v407_v11, 1  ;;  %v448_v40 = vmul.f32 %v1351_v56, %v253_v29  ;;  %665 = vmatpush.msra.mxu2 %v637_v47  ;;  %v256_v12 = vadd.f32 %v1754_v1, %v1752_v58  ;;  %v631_v29 = vld [vmem:[#allocation5 + $0x48] sm:$0xff] }
  0xe6   :  { %1352 = vpow2.f32 %v388_v59  ;;  %v354_v0 = vrot.slane %v353_v61, 1  ;;  %v356_v4 = vrot.slane %v323_v63, 4  ;;  %v456_v48 = vrot.slane %v455_v34, 2 }
  0xe7   :  { %v411_v6 = vadd.f32 %v1351_v56, %v410_v60  ;;  %1354 = vrcp.f32 %v1758_v8  ;;  %v1773_v21 = vadd.f32 %v408_v24, %v407_v11  ;;  %v636_v56 = vld [vmem:[#allocation5 + $0x70] sm:$0xff]  ;;  %v466_v62 = vrot.slane %v448_v40, 4 }
  0xe8   :  { %v355_v49 = vmax.f32 %v353_v61, %v354_v0  ;;  %v357_v9 = vmax.f32 %v323_v63, %v356_v4  ;;  %666 = vmatpush.msra.mxu2 %v636_v56  ;;  %v635_v0 = vld [vmem:[#allocation5 + $0x68] sm:$0xff]  ;;  %v457_v2 = vadd.f32 %v456_v48, %v455_v34  ;;  %v511_v1 = vand.u32 2147483647, %v1758_v8  ;;  %v628_v56 = vld [vmem:[#allocation5 + $0x30] sm:$0xff] }
  0xe9   :  { %v223_v7 = vpop.f32.mrf.mxu0  ;;  %v412_v15 = vrot.slane %v411_v6, 2  ;;  %v513_v25 = vand.u32 2147483648, %v1758_v8  ;;  %vm522_vm4 = vweird.f32 %v1773_v21 }
  0xea   :  { %v378_v13 = vsub.f32 %v322_v39, %v355_v49  ;;  %v224_v14 = vadd.f32 %v223_v7, %v1739_v50  ;;  %v358_v17 = vrot.slane %v357_v9, 2  ;;  %667 = vmatpush.msra.mxu2 %v635_v0  ;;  %v634_v7 = vld [vmem:[#allocation5 + $0x60] sm:$0xff]  ;;  %vm1820_vm2 = vcmp.eq.f32.partialorder %v511_v1, 8.507059e+37  ;;  %v625_v1 = vld [vmem:[#allocation5 + $0x18] sm:$0xff] }
  0xeb   :  { %v413_v26 = vadd.f32 %v412_v15, %v411_v6 }
  0xec   :  { %v1760_v10 = vpop.eup %1352  ;;  %v390_v18 = vmul.f32 1.442695, %v378_v13  ;;  %v359_v23 = vmax.f32 %v357_v9, %v358_v17  ;;  %v1768_v22 = vadd.f32 %v311_v20, %v224_v14  ;;  %v462_v9 = vrot.slane %v461_v57, 2  ;;  %668 = vmatpush.msra.mxu2 %v634_v7  ;;  %v633_v13 = vld [vmem:[#allocation5 + $0x58] sm:$0xff] }
  0xed   :  { %v416_v16 = vrot.slane %v1760_v10, 4  ;;  %v1771_v33 = vpop.eup %1354  ;;  %v414_v36 = vrot.slane %v413_v26, 1  ;;  %v449_v42 = vmul.f32 %v1760_v10, %v256_v12 }
  0xee   :  { %1356 = vpow2.f32 %v390_v18  ;;  %v360_v32 = vrot.slane %v359_v23, 1  ;;  %v362_v35 = vrot.slane %v1768_v22, 4  ;;  %v503_v43 = vmul.f32 %v1771_v33, %v1758_v8  ;;  %669 = vmatpush.msra.mxu2 %v633_v13 }
  0xef   :  { %v417_v19 = vadd.f32 %v1760_v10, %v416_v16  ;;  %1358 = vrcp.f32 %v1773_v21  ;;  %v467_v16 = vadd.f32 %v466_v62, %v448_v40  ;;  %v458_v18 = vrot.slane %v457_v2, 1 }
  0xf0   :  { %v361_v37 = vmax.f32 %v359_v23, %v360_v32  ;;  %v363_v41 = vmax.f32 %v1768_v22, %v362_v35  ;;  %v504_v60 = vsub.f32 1.0, %v503_v43  ;;  %v1803_v23 = vadd.f32 %v258_v27, %v1752_v58  ;;  %670 = vmatpush.msra.mxu2 %v632_v5 }
  0xf1   :  { %v226_v30 = vpop.f32.mrf.mxu0  ;;  %v418_v31 = vrot.slane %v417_v19, 2  ;;  %vm508_vm0 = vweird.f32 %v1771_v33  ;;  %v468_v34 = vrot.slane %v467_v16, 2  ;;  %v459_v40 = vadd.f32 %v458_v18, %v457_v2 }
  0xf2   :  { %v227_v38 = vadd.f32 %v226_v30, %v1739_v50  ;;  %v379_v46 = vsub.f32 %v323_v63, %v361_v37  ;;  %v364_v52 = vrot.slane %v363_v41, 2  ;;  %v1784_v50 = vadd.f32 %v414_v36, %v413_v26  ;;  %v1789_v63 = vpop.f32.mrf.mxu1  ;;  %v630_v36 = vld [vmem:[#allocation5 + $0x40] sm:$0xff]  ;;  %671 = vmatpush.msra.mxu2 %v631_v29  ;;  %vm1828_vm3 = vmor %vm507_vm1, %vm508_vm0 }
  0xf3   :  { %v419_v44 = vadd.f32 %v418_v31, %v417_v19  ;;  %v505_v14 = vmul.f32 %v1771_v33, %v504_v60  ;;  %v463_v30 = vadd.f32 %v462_v9, %v461_v57  ;;  %v514_v8 = vor.u32 1.1754944e-38, %v513_v25 }
  0xf4   :  { %v1777_v39 = vpop.eup %1356  ;;  %v392_v54 = vmul.f32 1.442695, %v379_v46  ;;  %v1787_v55 = vadd.f32 %v316_v51, %v227_v38  ;;  %v365_v59 = vmax.f32 %v363_v41, %v364_v52  ;;  %672 = vmatpush.msra.mxu2 %v630_v36  ;;  %v526_v52 = vand.u32 2147483647, %v1773_v21 }
  0xf5   :  { %v422_v45 = vrot.slane %v1777_v39, 4  ;;  %v420_v61 = vrot.slane %v419_v44, 1  ;;  %v1793_v49 = vpop.eup %1358  ;;  %v506_v32 = vadd.f32 %v1771_v33, %v505_v14  ;;  %v464_v47 = vrot.slane %v463_v30, 1  ;;  %v626_v14 = vld [vmem:[#allocation5 + $0x20] sm:$0xff] }
  0xf6   :  { %1360 = vpow2.f32 %v392_v54  ;;  %v366_v4 = vrot.slane %v365_v59, 1  ;;  %v368_v6 = vrot.slane %v1787_v55, 4  ;;  %v518_v26 = vmul.f32 %v1793_v49, %v1773_v21 }
  0xf7   :  { %v423_v53 = vadd.f32 %v1777_v39, %v422_v45  ;;  %1362 = vrcp.f32 %v1784_v50  ;;  %v1798_v15 = vadd.f32 %v420_v61, %v419_v44  ;;  %v629_v45 = vld [vmem:[#allocation5 + $0x38] sm:$0xff]  ;;  %v510_v57 = vsel %vm1828_vm3, %v1771_v33, %v506_v32 }
  0xf8   :  { %v367_v11 = vmax.f32 %v365_v59, %v366_v4  ;;  %v369_v17 = vmax.f32 %v1787_v55, %v368_v6  ;;  %v519_v41 = vsub.f32 1.0, %v518_v26  ;;  %v472_v61 = vrot.slane %v449_v42, 4  ;;  %673 = vmatpush.msra.mxu2 %v629_v45  ;;  %v627_v4 = vld [vmem:[#allocation5 + $0x28] sm:$0xff] }
  0xf9   :  { %v424_v3 = vrot.slane %v423_v53, 2  ;;  %1364 = vrcp.f32 %v1798_v15  ;;  %v1845_v7 = vadd.f32 %v464_v47, %v463_v30  ;;  %v528_v33 = vand.u32 2147483648, %v1773_v21 }
  0xfa   :  { %v380_v20 = vsub.f32 %v1768_v22, %v367_v11  ;;  %v370_v28 = vrot.slane %v369_v17, 2  ;;  %v264_v44 = vpop.f32.mrf.mxu1  ;;  %v520_v0 = vmul.f32 %v1793_v49, %v519_v41  ;;  %674 = vmatpush.msra.mxu2 %v628_v56  ;;  %v515_v12 = vsel %vm1820_vm2, %v514_v8, %v510_v57 }
  0xfb   :  { %v425_v19 = vadd.f32 %v424_v3, %v423_v53  ;;  %v469_v53 = vadd.f32 %v468_v34, %v467_v16  ;;  %v262_v3 = vadd.f32 %v1789_v63, %v1752_v58  ;;  %vm523_vm5 = vweird.f32 %v1793_v49  ;;  %v624_v34 = vld [vmem:[#allocation5 + $0x10] sm:$0xff] }
  0xfc   :  { %v1805_v24 = vpop.eup %1360  ;;  %v394_v31 = vmul.f32 1.442695, %v380_v20  ;;  %v371_v35 = vmax.f32 %v369_v17, %v370_v28  ;;  %vm1851_vm6 = vcmp.eq.f32.partialorder %v526_v52, 8.507059e+37  ;;  %v473_v17 = vadd.f32 %v472_v61, %v449_v42  ;;  %675 = vmatpush.msra.mxu2 %v627_v4  ;;  %vm1874_vm7 = vmor %vm522_vm4, %vm523_vm5  ;;  %v623_v42 = vld [vmem:[#allocation5 + $0x8] sm:$0xff] }
  0xfd   :  { %v428_v22 = vrot.slane %v1805_v24, 4  ;;  %v1813_v27 = vpop.eup %1362  ;;  %v426_v37 = vrot.slane %v425_v19, 1  ;;  %v470_v16 = vrot.slane %v469_v53, 1  ;;  %v521_v18 = vadd.f32 %v1793_v49, %v520_v0 }
  0xfe   :  { %1366 = vpow2.f32 %v394_v31  ;;  %v372_v43 = vrot.slane %v371_v35, 1  ;;  %v533_v48 = vmul.f32 %v1813_v27, %v1784_v50  ;;  %v529_v25 = vor.u32 1.1754944e-38, %v528_v33  ;;  %676 = vmatpush.msra.mxu2 %v626_v14 }
  0xff   :  { %v429_v38 = vadd.f32 %v1805_v24, %v428_v22  ;;  %v1836_v59 = vadd.f32 %v426_v37, %v425_v19  ;;  %v1838_v62 = vpop.eup %1364  ;;  %v541_v28 = vand.u32 2147483647, %v1784_v50  ;;  %v543_v29 = vand.u32 2147483648, %v1784_v50 }
 0x100   :  { %v373_v54 = vmax.f32 %v371_v35, %v372_v43  ;;  %v534_v9 = vsub.f32 1.0, %v533_v48  ;;  %v548_v20 = vmul.f32 %v1838_v62, %v1798_v15  ;;  %v450_v22 = vmul.f32 %v1777_v39, %v1803_v23  ;;  %677 = vmatpush.msra.mxu2 %v625_v1  ;;  %v622_v48 = vld [vmem:[#allocation5] sm:$0xff] }
 0x101   :  { %v430_v51 = vrot.slane %v429_v38, 2  ;;  %1368 = vrcp.f32 %v1836_v59  ;;  %v451_v31 = vmul.f32 %v1805_v24, %v262_v3  ;;  %v1868_v35 = vmul.f32 %v515_v12, %v459_v40 }
 0x102   :  { %v381_v2 = vsub.f32 %v1787_v55, %v373_v54  ;;  %v535_v26 = vmul.f32 %v1813_v27, %v534_v9  ;;  %v267_v32 = vpop.f32.mrf.mxu1  ;;  %vm537_vm8 = vweird.f32 %v1784_v50  ;;  %v474_v37 = vrot.slane %v473_v17, 2  ;;  %678 = vmatpush.msra.mxu2 %v624_v34 }
 0x103   :  { %v431_v60 = vadd.f32 %v430_v51, %v429_v38  ;;  %v265_v38 = vadd.f32 %v264_v44, %v1752_v58  ;;  %v525_v39 = vsel %vm1874_vm7, %v1793_v49, %v521_v18  ;;  %v471_v23 = vadd.f32 %v470_v16, %v469_v53 }
 0x104   :  { %v1367_v6 = vpop.eup %1366  ;;  %v396_v63 = vmul.f32 1.442695, %v381_v2  ;;  %v549_v24 = vsub.f32 1.0, %v548_v20  ;;  %v536_v21 = vadd.f32 %v1813_v27, %v535_v26  ;;  %vm538_vm9 = vweird.f32 %v1813_v27  ;;  %679 = vmatpush.msra.mxu2 %v623_v42 }
 0x105   :  { %v432_v11 = vrot.slane %v431_v60, 1  ;;  %v434_v55 = vrot.slane %v1367_v6, 4  ;;  %vm1887_vm10 = vcmp.eq.f32.partialorder %v541_v28, 8.507059e+37  ;;  %v268_v44 = vadd.f32 %v267_v32, %v1752_v58  ;;  %vm1900_vm11 = vmor %vm537_vm8, %vm538_vm9 }
 0x106   :  { %1370 = vpow2.f32 %v396_v63  ;;  %v544_v46 = vor.u32 1.1754944e-38, %v543_v29  ;;  %v478_v49 = vrot.slane %v450_v22, 4  ;;  %v484_v47 = vrot.slane %v451_v31, 4  ;;  %680 = vmatpush.msra.mxu2 %v622_v48 }
 0x107   :  { %v1856_v5 = vadd.f32 %v432_v11, %v431_v60  ;;  %v435_v19 = vadd.f32 %v1367_v6, %v434_v55  ;;  %v1883_v41 = vpop.eup %1368  ;;  %v530_v8 = vsel %vm1851_vm6, %v529_v25, %v525_v39  ;;  %v475_v52 = vadd.f32 %v474_v37, %v473_v17 }
 0x108   :  { %v452_v54 = vmul.f32 %v1367_v6, %v265_v38  ;;  %v550_v56 = vmul.f32 %v1838_v62, %v549_v24  ;;  %v556_v57 = vand.u32 2147483647, %v1798_v15  ;;  %v558_v60 = vand.u32 2147483648, %v1798_v15  ;;  %v1343_v24 = vld [vmem:[%s2128_s5] ss:$0 sm:$0xff] }
 0x109   :  { %1372 = vrcp.f32 %v1856_v5  ;;  %v436_v30 = vrot.slane %v435_v19, 2  ;;  %v540_v0 = vsel %vm1900_vm11, %v1813_v27, %v536_v21  ;;  %v563_v50 = vmul.f32 %v1883_v41, %v1836_v59 }
 0x10a   :  { %v479_v4 = vadd.f32 %v478_v49, %v450_v22  ;;  %v485_v6 = vadd.f32 %v484_v47, %v451_v31  ;;  %v531_v9 = vmul.f32 %v530_v8, %v1845_v7  ;;  %v476_v11 = vrot.slane %v475_v52, 1 }
 0x10b   :  { %v437_v40 = vadd.f32 %v436_v30, %v435_v19  ;;  %v490_v12 = vrot.slane %v452_v54, 4  ;;  %v551_v27 = vadd.f32 %v1838_v62, %v550_v56  ;;  %vm552_vm12 = vweird.f32 %v1798_v15 }
 0x10c   :  { %v1371_v45 = vpop.eup %1370  ;;  %vm553_vm13 = vweird.f32 %v1838_v62  ;;  %vm1921_vm14 = vcmp.eq.f32.partialorder %v556_v57, 8.507059e+37  ;;  %v545_v63 = vsel %vm1887_vm10, %v544_v46, %v540_v0  ;;  %v564_v14 = vsub.f32 1.0, %v563_v50 }
 0x10d   :  { %v438_v51 = vrot.slane %v437_v40, 1  ;;  %v440_v53 = vrot.slane %v1371_v45, 4  ;;  %v453_v3 = vmul.f32 %v1371_v45, %v268_v44  ;;  %v559_v7 = vor.u32 1.1754944e-38, %v558_v60  ;;  %vm1927_vm15 = vmor %vm552_vm12, %vm553_vm13 }
 0x10e   :  { %v480_v18 = vrot.slane %v479_v4, 2  ;;  %v486_v19 = vrot.slane %v485_v6, 2  ;;  %v477_v1 = vadd.f32 %v476_v11, %v475_v52  ;;  %v571_v15 = vand.u32 2147483647, %v1836_v59 }
 0x10f   :  { %v1892_v10 = vpop.eup %1372  ;;  %v1907_v61 = vadd.f32 %v438_v51, %v437_v40  ;;  %v441_v2 = vadd.f32 %v1371_v45, %v440_v53  ;;  %v496_v16 = vrot.slane %v453_v3, 4  ;;  %v491_v26 = vadd.f32 %v490_v12, %v452_v54 }
 0x110   :  { %v578_v33 = vmul.f32 %v1892_v10, %v1856_v5  ;;  %v1934_v30 = vmul.f32 %v545_v63, %v471_v23  ;;  %v555_v22 = vsel %vm1927_vm15, %v1838_v62, %v551_v27  ;;  %v573_v31 = vand.u32 2147483648, %v1836_v59 }
 0x111   :  { %1374 = vrcp.f32 %v1907_v61  ;;  %v442_v13 = vrot.slane %v441_v2, 2  ;;  %vm650_vm0 = vcmask 1041409   ;;  %v565_v32 = vmul.f32 %v1883_v41, %v564_v14 }
 0x112   :  { %v579_v20 = vsub.f32 1.0, %v578_v33  ;;  %v497_v34 = vadd.f32 %v496_v16, %v453_v3  ;;  %v481_v38 = vadd.f32 %v480_v18, %v479_v4  ;;  %vm567_vm1 = vweird.f32 %v1836_v59 }
 0x113   :  { %v443_v17 = vadd.f32 %v442_v13, %v441_v2  ;;  %v487_v39 = vadd.f32 %v486_v19, %v485_v6  ;;  %vm1947_vm2 = vcmp.eq.f32.partialorder %v571_v15, 8.507059e+37  ;;  %v492_v62 = vrot.slane %v491_v26, 2 }
 0x114   :  { %v580_v23 = vmul.f32 %v1892_v10, %v579_v20  ;;  %v560_v40 = vsel %vm1921_vm14, %v559_v7, %v555_v22  ;;  %v574_v21 = vor.u32 1.1754944e-38, %v573_v31  ;;  %v651_v43 = vsel %vm650_vm0, %v531_v9, %v1868_v35 }
 0x115   :  { %v444_v28 = vrot.slane %v443_v17, 1  ;;  %vm652_vm3 = vcmask 1042434   ;;  %v566_v44 = vadd.f32 %v1883_v41, %v565_v32  ;;  %vm568_vm4 = vweird.f32 %v1883_v41 }
 0x116   :  { %v498_v45 = vrot.slane %v497_v34, 2  ;;  %v482_v49 = vrot.slane %v481_v38, 1  ;;  %v488_v47 = vrot.slane %v487_v39, 1  ;;  %v581_v48 = vadd.f32 %v1892_v10, %v580_v23  ;;  %vm1965_vm7 = vmor %vm567_vm1, %vm568_vm4  ;;  %v767_v23 = vld [vmem:[#allocation7 + $0xf8] sm:$0xff] }
 0x117   :  { %v1932_v29 = vpop.eup %1374  ;;  %v1941_v36 = vadd.f32 %v444_v28, %v443_v17  ;;  %vm583_vm5 = vweird.f32 %v1892_v10  ;;  %v493_v51 = vadd.f32 %v492_v62, %v491_v26  ;;  %v588_v8 = vand.u32 2147483648, %v1856_v5  ;;  %794 = vmatpush.msrb.mxu2 %v767_v23 }
 0x118   :  { %v593_v37 = vmul.f32 %v1932_v29, %v1907_v61  ;;  %vm598_vm6 = vweird.f32 %v1932_v29  ;;  %v561_v35 = vmul.f32 %v560_v40, %v477_v1  ;;  %vm582_vm8 = vweird.f32 %v1856_v5  ;;  %v765_v40 = vld [vmem:[#allocation7 + $0xe8] sm:$0xff] }
 0x119   :  { %1376 = vrcp.f32 %v1941_v36  ;;  %v586_v54 = vand.u32 2147483647, %v1856_v5  ;;  %v603_v58 = vand.u32 2147483648, %v1907_v61  ;;  %v570_v57 = vsel %vm1965_vm7, %v1883_v41, %v566_v44  ;;  %vm1975_vm9 = vmor %vm582_vm8, %vm583_vm5  ;;  %795 = vmatpush.msrb.mxu2 %v765_v40  ;;  %v760_v44 = vld [vmem:[#allocation7 + $0xc0] sm:$0xff] }
 0x11a   :  { %v594_v42 = vsub.f32 1.0, %v593_v37  ;;  %v499_v60 = vadd.f32 %v498_v45, %v497_v34  ;;  %vm597_vm10 = vweird.f32 %v1907_v61  ;;  %v601_v59 = vand.u32 2147483647, %v1907_v61  ;;  %v761_v45 = vld [vmem:[#allocation7 + $0xc8] sm:$0xff] }
 0x11b   :  { %v483_v2 = vadd.f32 %v482_v49, %v481_v38  ;;  %v585_v5 = vsel %vm1975_vm9, %v1892_v10, %v581_v48  ;;  %vm1984_vm11 = vmor %vm597_vm10, %vm598_vm6  ;;  %vm654_vm12 = vcmask 1043459   ;;  %v489_v3 = vadd.f32 %v488_v47, %v487_v39  ;;  %v766_v39 = vld [vmem:[#allocation7 + $0xf0] sm:$0xff] }
 0x11c   :  { %v595_v46 = vmul.f32 %v1932_v29, %v594_v42  ;;  %v494_v4 = vrot.slane %v493_v51, 1  ;;  %v589_v6 = vor.u32 1.1754944e-38, %v588_v8  ;;  %v575_v61 = vsel %vm1947_vm2, %v574_v21, %v570_v57  ;;  %774 = vmatpush.msra.mxu3 %v766_v39  ;;  %v764_v42 = vld [vmem:[#allocation7 + $0xe0] sm:$0xff]  ;;  %v762_v21 = vld [vmem:[#allocation7 + $0xd0] sm:$0xff] }
 0x11d   :  { %vm587_vm13 = vcmp.eq.f32.partialorder %v586_v54, 8.507059e+37  ;;  %v604_v9 = vor.u32 1.1754944e-38, %v603_v58  ;;  %v500_v11 = vrot.slane %v499_v60, 1  ;;  %vm602_vm14 = vcmp.eq.f32.partialorder %v601_v59, 8.507059e+37  ;;  %v758_v48 = vld [vmem:[#allocation7 + $0xb0] sm:$0xff]  ;;  %v755_v58 = vld [vmem:[#allocation7 + $0x98] sm:$0xff] }
 0x11e   :  { %v596_v52 = vadd.f32 %v1932_v29, %v595_v46  ;;  %v590_v12 = vsel %vm587_vm13, %v589_v6, %v585_v5  ;;  %v618_v13 = vand.u32 2147483648, %v1941_v36  ;;  %v616_v63 = vand.u32 2147483647, %v1941_v36  ;;  %775 = vmatpush.msra.mxu3 %v764_v42  ;;  %v754_v54 = vld [vmem:[#allocation7 + $0x90] sm:$0xff]  ;;  %v752_v57 = vld [vmem:[#allocation7 + $0x80] sm:$0xff] }
 0x11f   :  { %v1377_v56 = vpop.eup %1376  ;;  %v576_v14 = vmul.f32 %v575_v61, %v483_v2  ;;  %v495_v16 = vadd.f32 %v494_v4, %v493_v51  ;;  %v653_v17 = vsel %vm652_vm3, %v1934_v30, %v651_v43  ;;  %v591_v7 = vmul.f32 %v590_v12, %v489_v3  ;;  %v763_v43 = vld [vmem:[#allocation7 + $0xd8] sm:$0xff]  ;;  %v750_v59 = vld [vmem:[#allocation7 + $0x70] sm:$0xff]  ;;  %v749_v3 = vld [vmem:[#allocation7 + $0x68] sm:$0xff] }
 0x120   :  { %v608_v41 = vmul.f32 %v1377_v56, %v1941_v36  ;;  %v600_v33 = vsel %vm1984_vm11, %v1932_v29, %v596_v52  ;;  %vm613_vm15 = vweird.f32 %v1377_v56  ;;  %vm612_vm0 = vweird.f32 %v1941_v36  ;;  %776 = vmatpush.msra.mxu3 %v762_v21  ;;  %796 = vmatpush.msrb.mxu2 %v763_v43  ;;  %v759_v51 = vld [vmem:[#allocation7 + $0xb8] sm:$0xff]  ;;  %v756_v52 = vld [vmem:[#allocation7 + $0xa0] sm:$0xff] }
 0x121   :  { %v605_v27 = vsel %vm602_vm14, %v604_v9, %v600_v33  ;;  %vm656_vm1 = vcmask 1044484   ;;  %vm614_vm2 = vmor %vm612_vm0, %vm613_vm15  ;;  %v619_v20 = vor.u32 1.1754944e-38, %v618_v13  ;;  %v655_v1 = vsel %vm654_vm12, %v561_v35, %v653_v17  ;;  %v757_v35 = vld [vmem:[#allocation7 + $0xa8] sm:$0xff]  ;;  %v751_v2 = vld [vmem:[#allocation7 + $0x78] sm:$0xff] }
 0x122   :  { %v609_v10 = vsub.f32 1.0, %v608_v41  ;;  %v606_v19 = vmul.f32 %v605_v27, %v495_v16  ;;  %vm658_vm4 = vcmask 1045509   ;;  %v501_v25 = vadd.f32 %v500_v11, %v499_v60  ;;  %777 = vmatpush.msra.mxu3 %v760_v44  ;;  %797 = vmatpush.msrb.mxu2 %v761_v45  ;;  %v753_v60 = vld [vmem:[#allocation7 + $0x88] sm:$0xff]  ;;  %v748_v41 = vld [vmem:[#allocation7 + $0x60] sm:$0xff]  ;;  %v746_v33 = vld [vmem:[#allocation7 + $0x50] sm:$0xff] }
 0x123   :  { %vm617_vm5 = vcmp.eq.f32.partialorder %v616_v63, 8.507059e+37  ;;  %vm660_vm6 = vcmask 1046534   ;;  %v657_v28 = vsel %vm656_vm1, %v576_v14, %v655_v1  ;;  %vm662_vm7 = vcmask 1047559   ;;  %v747_v61 = vld [vmem:[#allocation7 + $0x58] sm:$0xff]  ;;  %v745_v11 = vld [vmem:[#allocation7 + $0x48] sm:$0xff]  ;;  %v742_v27 = vld [vmem:[#allocation7 + $0x30] sm:$0xff] }
 0x124   :  { %v610_v55 = vmul.f32 %v1377_v56, %v609_v10  ;;  %v659_v30 = vsel %vm658_vm4, %v591_v7, %v657_v28  ;;  %v1581_v32 = vmov 1.4142135   ;;  %778 = vmatpush.msra.mxu3 %v758_v48  ;;  %798 = vmatpush.msrb.mxu2 %v759_v51  ;;  %v744_v10 = vld [vmem:[#allocation7 + $0x40] sm:$0xff]  ;;  %v741_v16 = vld [vmem:[#allocation7 + $0x28] sm:$0xff]  ;;  %v964_v1 = vld [vmem:[#allocation8 + $0x1f0] sm:$0xff] }
 0x125   :  { %v661_v22 = vsel %vm660_vm6, %v606_v19, %v659_v30  ;;  %1378 = vrcp.f32 %v1581_v32  ;;  %v740_v14 = vld [vmem:[#allocation7 + $0x20] sm:$0xff]  ;;  %v739_v19 = vld [vmem:[#allocation7 + $0x18] sm:$0xff]  ;;  %992 = vmatpush.msrb.mxu0 %v964_v1  ;;  %v952_v1 = vld [vmem:[#allocation8 + $0x190] sm:$0xff] }
 0x126   :  { %v611_v18 = vadd.f32 %v1377_v56, %v610_v55  ;;  %779 = vmatpush.msra.mxu3 %v756_v52  ;;  %799 = vmatpush.msrb.mxu2 %v757_v35  ;;  %v743_v55 = vld [vmem:[#allocation7 + $0x38] sm:$0xff]  ;;  %v768_v52 = vld [vmem:[%s2130_s7] sm:$0x3] }
 0x127   :  { %v933_v35 = vld [vmem:[#allocation8 + $0xf8] sm:$0xff] }
 0x128   :  { %v615_v15 = vsel %vm614_vm2, %v1377_v56, %v611_v18  ;;  %780 = vmatpush.msra.mxu3 %v754_v54  ;;  %800 = vmatpush.msrb.mxu2 %v755_v58  ;;  %v738_v18 = vld [vmem:[#allocation7 + $0x10] sm:$0xff]  ;;  %v965_v54 = vld [vmem:[#allocation8 + $0x1f8] sm:$0xff]  ;;  %v771_v58 = vperm.slane %v768_v52, 1 }
 0x129   :  { %v620_v26 = vsel %vm617_vm5, %v619_v20, %v615_v15  ;;  %v737_v15 = vld [vmem:[#allocation7 + $0x8] sm:$0xff]  ;;  %1012 = vmatpush.msrb.mxu1 %v933_v35 }
 0x12a   :  { %v621_v29 = vmul.f32 %v620_v26, %v501_v25  ;;  %781 = vmatpush.msra.mxu3 %v752_v57  ;;  %801 = vmatpush.msrb.mxu2 %v753_v60  ;;  %v736_v25 = vld [vmem:[#allocation7] sm:$0xff]  ;;  %v931_v57 = vld [vmem:[#allocation8 + $0xe8] sm:$0xff] }
 0x12b   :  { %v1379_v34 = vpop.eup %1378  ;;  %v930_v60 = vld [vmem:[#allocation8 + $0xe0] sm:$0xff]  ;;  %1013 = vmatpush.msrb.mxu1 %v931_v57 }
 0x12c   :  { %v663_v31 = vsel %vm662_vm7, %v621_v29, %v661_v22  ;;  %v687_v36 = vmul.f32 1.4142135, %v1379_v34  ;;  %vm691_vm3 = vweird.f32 %v1379_v34  ;;  %782 = vmatpush.msra.mxu3 %v750_v59  ;;  %802 = vmatpush.msrb.mxu2 %v751_v2  ;;  %v929_v59 = vld [vmem:[#allocation8 + $0xd8] sm:$0xff]  ;;  %v928_v2 = vld [vmem:[#allocation8 + $0xd0] sm:$0xff] }
 0x12d   :  { %681 = vmatmul.f32.vlgmr.msra.gmra.mxu2 %v663_v31  ;;  %1014 = vmatpush.msrb.mxu1 %v929_v59  ;;  %v910_v59 = vld [vmem:[#allocation8 + $0x40] sm:$0xff] }
 0x12e   :  { %v688_v37 = vsub.f32 1.0, %v687_v36  ;;  %783 = vmatpush.msra.mxu3 %v748_v41  ;;  %803 = vmatpush.msrb.mxu2 %v749_v3  ;;  %v961_v41 = vld [vmem:[#allocation8 + $0x1d8] sm:$0xff] }
 0x130   :  { %v689_v38 = vmul.f32 %v1379_v34, %v688_v37  ;;  %784 = vmatpush.msra.mxu3 %v746_v33  ;;  %804 = vmatpush.msrb.mxu2 %v747_v61  ;;  %v927_v33 = vld [vmem:[#allocation8 + $0xc8] sm:$0xff]  ;;  %v926_v61 = vld [vmem:[#allocation8 + $0xc0] sm:$0xff] }
 0x131   :  { %1015 = vmatpush.msrb.mxu1 %v927_v33  ;;  %v943_v33 = vld [vmem:[#allocation8 + $0x148] sm:$0xff] }
 0x132   :  { %v690_v62 = vadd.f32 %v1379_v34, %v689_v38  ;;  %785 = vmatpush.msra.mxu3 %v744_v10  ;;  %805 = vmatpush.msrb.mxu2 %v745_v11 }
 0x134   :  { %v2003_v49 = vsel %vm691_vm3, %v1379_v34, %v690_v62  ;;  %786 = vmatpush.msra.mxu3 %v742_v27  ;;  %806 = vmatpush.msrb.mxu2 %v743_v55  ;;  %v924_v27 = vld [vmem:[#allocation8 + $0xb0] sm:$0xff]  ;;  %v957_v55 = vld [vmem:[#allocation8 + $0x1b8] sm:$0xff] }
 0x136   :  { %787 = vmatpush.msra.mxu3 %v740_v14  ;;  %807 = vmatpush.msrb.mxu2 %v741_v16  ;;  %v954_v16 = vld [vmem:[#allocation8 + $0x1a0] sm:$0xff] }
 0x138   :  { %788 = vmatpush.msra.mxu3 %v738_v18  ;;  %808 = vmatpush.msrb.mxu2 %v739_v19  ;;  %v955_v18 = vld [vmem:[#allocation8 + $0x1a8] sm:$0xff] }
 0x13a   :  { %789 = vmatpush.msra.mxu3 %v736_v25  ;;  %809 = vmatpush.msrb.mxu2 %v737_v15  ;;  %v921_v25 = vld [vmem:[#allocation8 + $0x98] sm:$0xff]  ;;  %v920_v15 = vld [vmem:[#allocation8 + $0x90] sm:$0xff] }
 0x13c   :  { %1032 = vmatpush.msra.mxu2 %v965_v54 }
 0x1b0   :  { %v682_v46 = vpop.f32.mrf.mxu2 }
 0x1b1   :  { %v2005_v47 = vadd.f32 %v1343_v24, %v682_v46 }
 0x1b3   :  { %v2009_v8 = vmul.f32 %v2003_v49, %v2005_v47  ;;  %v685_v46 = vmul.f32 0.5, %v2005_v47  ;;  %v963_v47 = vld [vmem:[#allocation8 + $0x1e8] sm:$0xff] }
 0x1b4   :  { %1033 = vmatpush.msra.mxu2 %v963_v47  ;;  %v913_v47 = vld [vmem:[#allocation8 + $0x58] sm:$0xff] }
 0x1b5   :  { %v694_v53 = vmul.f32 %v2009_v8, %v2009_v8 }
 0x1b6   :  { %1034 = vmatpush.msra.mxu2 %v961_v41 }
 0x1b7   :  { %v695_v56 = vmin.f32 %v694_v53, 16.0  ;;  %v932_v53 = vld [vmem:[#allocation8 + $0xf0] sm:$0xff] }
 0x1b8   :  { %972 = vmatpush.msrb.mxu3 %v932_v53  ;;  %v947_v53 = vld [vmem:[#allocation8 + $0x168] sm:$0xff] }
 0x1b9   :  { %v696_v0 = vmul.f32 2.1237322e-06, %v695_v56  ;;  %v707_v5 = vmul.f32 3.8918573e-05, %v695_v56 }
 0x1ba   :  { %973 = vmatpush.msrb.mxu3 %v930_v60 }
 0x1bb   :  { %v697_v50 = vadd.f32 0.00028619796, %v696_v0  ;;  %v708_v4 = vadd.f32 0.001143296, %v707_v5  ;;  %v960_v0 = vld [vmem:[#allocation8 + $0x1d0] sm:$0xff] }
 0x1bc   :  { %974 = vmatpush.msrb.mxu3 %v928_v2 }
 0x1bd   :  { %v698_v6 = vmul.f32 %v697_v50, %v695_v56  ;;  %v709_v9 = vmul.f32 %v708_v4, %v695_v56 }
 0x1be   :  { %975 = vmatpush.msrb.mxu3 %v926_v61 }
 0x1bf   :  { %v710_v12 = vadd.f32 0.014752088, %v709_v9  ;;  %v699_v13 = vadd.f32 0.0036580483, %v698_v6  ;;  %v958_v6 = vld [vmem:[#allocation8 + $0x1c0] sm:$0xff]  ;;  %v959_v9 = vld [vmem:[#allocation8 + $0x1c8] sm:$0xff] }
 0x1c0   :  { %1035 = vmatpush.msra.mxu2 %v959_v9  ;;  %976 = vmatpush.msrb.mxu3 %v924_v27  ;;  %v908_v9 = vld [vmem:[#allocation8 + $0x30] sm:$0xff] }
 0x1c1   :  { %v711_v63 = vmul.f32 %v710_v12, %v695_v56  ;;  %v700_v7 = vmul.f32 %v699_v13, %v695_v56  ;;  %v956_v12 = vld [vmem:[#allocation8 + $0x1b0] sm:$0xff]  ;;  %v925_v13 = vld [vmem:[#allocation8 + $0xb8] sm:$0xff] }
 0x1c2   :  { %1016 = vmatpush.msrb.mxu1 %v925_v13  ;;  %1036 = vmatpush.msra.mxu2 %v957_v55  ;;  %v941_v55 = vld [vmem:[#allocation8 + $0x138] sm:$0xff] }
 0x1c3   :  { %v712_v17 = vadd.f32 0.112945676, %v711_v63  ;;  %v701_v28 = vadd.f32 0.05243302, %v700_v7  ;;  %v922_v7 = vld [vmem:[#allocation8 + $0xa0] sm:$0xff] }
 0x1c4   :  { %977 = vmatpush.msrb.mxu3 %v922_v7  ;;  %1037 = vmatpush.msra.mxu2 %v955_v18  ;;  %v936_v7 = vld [vmem:[#allocation8 + $0x110] sm:$0xff] }
 0x1c5   :  { %v713_v20 = vmul.f32 %v712_v17, %v695_v56  ;;  %v702_v22 = vmul.f32 %v701_v28, %v695_v56  ;;  %v923_v17 = vld [vmem:[#allocation8 + $0xa8] sm:$0xff] }
 0x1c6   :  { %1017 = vmatpush.msrb.mxu1 %v923_v17  ;;  %978 = vmatpush.msrb.mxu3 %v920_v15  ;;  %v907_v17 = vld [vmem:[#allocation8 + $0x28] sm:$0xff]  ;;  %v904_v15 = vld [vmem:[#allocation8 + $0x10] sm:$0xff] }
 0x1c7   :  { %v714_v26 = vadd.f32 0.4994258, %v713_v20  ;;  %v703_v31 = vadd.f32 0.18741608, %v702_v22 }
 0x1c8   :  { %1018 = vmatpush.msrb.mxu1 %v921_v25  ;;  %v939_v25 = vld [vmem:[#allocation8 + $0x128] sm:$0xff] }
 0x1c9   :  { %v715_v29 = vmul.f32 %v714_v26, %v695_v56  ;;  %v704_v34 = vmul.f32 %v703_v31, %v695_v56  ;;  %v962_v56 = vld [vmem:[#allocation8 + $0x1e0] sm:$0xff]  ;;  %v953_v26 = vld [vmem:[#allocation8 + $0x198] sm:$0xff] }
 0x1ca   :  { %993 = vmatpush.msrb.mxu0 %v962_v56  ;;  %1038 = vmatpush.msra.mxu2 %v953_v26  ;;  %v950_v31 = vld [vmem:[#allocation8 + $0x180] sm:$0xff]  ;;  %v912_v56 = vld [vmem:[#allocation8 + $0x50] sm:$0xff] }
 0x1cb   :  { %v716_v30 = vadd.f32 1.0, %v715_v29  ;;  %v705_v39 = vadd.f32 1.1283791, %v704_v34  ;;  %v918_v34 = vld [vmem:[#allocation8 + $0x80] sm:$0xff] }
 0x1cc   :  { %994 = vmatpush.msrb.mxu0 %v960_v0  ;;  %979 = vmatpush.msrb.mxu3 %v918_v34  ;;  %v945_v0 = vld [vmem:[#allocation8 + $0x158] sm:$0xff] }
 0x1cd   :  { %1380 = vrcp.f32 %v716_v30  ;;  %v728_v38 = vand.u32 2147483648, %v716_v30  ;;  %v726_v24 = vand.u32 2147483647, %v716_v30  ;;  %vm722_vm9 = vweird.f32 %v716_v30 }
 0x1ce   :  { %v706_v40 = vmul.f32 %v705_v39, %v2009_v8  ;;  %v770_v8 = vperm.slane %v768_v52, 0  ;;  %995 = vmatpush.msrb.mxu0 %v958_v6 }
 0x1cf   :  { %v729_v42 = vor.u32 1.1754944e-38, %v728_v38  ;;  %vm727_vm11 = vcmp.eq.f32.partialorder %v726_v24, 8.507059e+37  ;;  %v917_v24 = vld [vmem:[#allocation8 + $0x78] sm:$0xff] }
 0x1d0   :  { %996 = vmatpush.msrb.mxu0 %v956_v12  ;;  %v909_v12 = vld [vmem:[#allocation8 + $0x38] sm:$0xff] }
 0x1d2   :  { %997 = vmatpush.msrb.mxu0 %v954_v16 }
 0x1d3   :  { %v1381_v32 = vpop.eup %1380 }
 0x1d4   :  { %v718_v36 = vmul.f32 %v1381_v32, %v716_v30  ;;  %vm723_vm8 = vweird.f32 %v1381_v32  ;;  %998 = vmatpush.msrb.mxu0 %v952_v1 }
 0x1d5   :  { %vm724_vm10 = vmor %vm722_vm9, %vm723_vm8 }
 0x1d6   :  { %v719_v37 = vsub.f32 1.0, %v718_v36  ;;  %999 = vmatpush.msrb.mxu0 %v950_v31  ;;  %v902_v31 = vld [vmem:[#allocation8] sm:$0xff] }
 0x1d8   :  { %v720_v23 = vmul.f32 %v1381_v32, %v719_v37 }
 0x1da   :  { %v721_v62 = vadd.f32 %v1381_v32, %v720_v23  ;;  %v948_v23 = vld [vmem:[#allocation8 + $0x170] sm:$0xff] }
 0x1db   :  { %1000 = vmatpush.msrb.mxu0 %v948_v23 }
 0x1dc   :  { %v725_v21 = vsel %vm724_vm10, %v1381_v32, %v721_v62  ;;  %v919_v32 = vld [vmem:[#allocation8 + $0x88] sm:$0xff] }
 0x1dd   :  { %v730_v43 = vsel %vm727_vm11, %v729_v42, %v725_v21  ;;  %1019 = vmatpush.msrb.mxu1 %v919_v32  ;;  %v951_v62 = vld [vmem:[#allocation8 + $0x188] sm:$0xff]  ;;  %v934_v32 = vld [vmem:[#allocation8 + $0x100] sm:$0xff] }
 0x1de   :  { %v731_v44 = vmul.f32 %v730_v43, %v706_v40  ;;  %v946_v43 = vld [vmem:[#allocation8 + $0x160] sm:$0xff]  ;;  %1039 = vmatpush.msra.mxu2 %v951_v62 }
 0x1df   :  { %1020 = vmatpush.msrb.mxu1 %v917_v24  ;;  %1001 = vmatpush.msrb.mxu0 %v946_v43 }
 0x1e0   :  { %v1321_v45 = vclamps-f32 %v731_v44, 1.0  ;;  %v916_v44 = vld [vmem:[#allocation8 + $0x70] sm:$0xff] }
 0x1e1   :  { %980 = vmatpush.msrb.mxu3 %v916_v44 }
 0x1e2   :  { %v734_v48 = vadd.f32 1.0, %v1321_v45  ;;  %v949_v45 = vld [vmem:[#allocation8 + $0x178] sm:$0xff] }
 0x1e3   :  { %1040 = vmatpush.msra.mxu2 %v949_v45 }
 0x1e4   :  { %v735_v51 = vmul.f32 %v734_v48, %v685_v46  ;;  %v915_v48 = vld [vmem:[#allocation8 + $0x68] sm:$0xff] }
 0x1e5   :  { %1021 = vmatpush.msrb.mxu1 %v915_v48  ;;  %1041 = vmatpush.msra.mxu2 %v947_v53 }
 0x1e6   :  { %790 = vmatmul.f32.vlgmr.msra.gmra.mxu3 %v735_v51  ;;  %810 = vmatmul.f32.vlgmr.msrb.gmra.mxu2 %v735_v51  ;;  %v914_v51 = vld [vmem:[#allocation8 + $0x60] sm:$0xff] }
 0x1e7   :  { %981 = vmatpush.msrb.mxu3 %v914_v51  ;;  %1022 = vmatpush.msrb.mxu1 %v913_v47 }
 0x1e8   :  { %1042 = vmatpush.msra.mxu2 %v945_v0 }
 0x1e9   :  { %982 = vmatpush.msrb.mxu3 %v912_v56 }
 0x1ea   :  { %1043 = vmatpush.msra.mxu2 %v943_v33 }
 0x1eb   :  { %983 = vmatpush.msrb.mxu3 %v910_v59 }
 0x1ec   :  { %1044 = vmatpush.msra.mxu2 %v941_v55 }
 0x1ed   :  { %984 = vmatpush.msrb.mxu3 %v908_v9 }
 0x1ee   :  { %1045 = vmatpush.msra.mxu2 %v939_v25 }
 0x269   :  { %v791_v5 = vpop.f32.mrf.mxu3  ;;  %v811_v50 = vpop.f32.mrf.mxu2 }
 0x26a   :  { %v2018_v3 = vadd.f32 %v791_v5, %v770_v8  ;;  %v2020_v4 = vadd.f32 %v811_v50, %v771_v58  ;;  %v944_v8 = vld [vmem:[#allocation8 + $0x150] sm:$0xff]  ;;  %v942_v58 = vld [vmem:[#allocation8 + $0x140] sm:$0xff]  ;;  %v911_v5 = vld [vmem:[#allocation8 + $0x48] sm:$0xff] }
 0x26b   :  { %1002 = vmatpush.msrb.mxu0 %v944_v8  ;;  %v940_v50 = vld [vmem:[#allocation8 + $0x130] sm:$0xff]  ;;  %1023 = vmatpush.msrb.mxu1 %v911_v5 }
 0x26c   :  { %v2024_v10 = vmul.f32 %v2018_v3, %v2003_v49  ;;  %v2028_v11 = vmul.f32 %v2020_v4, %v2003_v49 }
 0x26d   :  { %1003 = vmatpush.msrb.mxu0 %v942_v58  ;;  %1024 = vmatpush.msrb.mxu1 %v909_v12  ;;  %v814_v12 = vmul.f32 0.5, %v2018_v3  ;;  %v1155_v3 = vld [vmem:[#allocation10 + $0x78] sm:$0xff] }
 0x26e   :  { %v818_v63 = vmul.f32 %v2024_v10, %v2024_v10  ;;  %v858_v14 = vmul.f32 %v2028_v11, %v2028_v11 }
 0x26f   :  { %1004 = vmatpush.msrb.mxu0 %v940_v50  ;;  %1025 = vmatpush.msrb.mxu1 %v907_v17 }
 0x270   :  { %v2034_v19 = vmin.f32 %v818_v63, 16.0  ;;  %v2036_v20 = vmin.f32 %v858_v14, 16.0  ;;  %v906_v63 = vld [vmem:[#allocation8 + $0x20] sm:$0xff] }
 0x271   :  { %v938_v14 = vld [vmem:[#allocation8 + $0x120] sm:$0xff]  ;;  %985 = vmatpush.msrb.mxu3 %v906_v63 }
 0x272   :  { %v820_v28 = vmul.f32 2.1237322e-06, %v2034_v19  ;;  %v831_v29 = vmul.f32 3.8918573e-05, %v2034_v19  ;;  %v860_v30 = vmul.f32 2.1237322e-06, %v2036_v20  ;;  %1005 = vmatpush.msrb.mxu0 %v938_v14 }
 0x273   :  { %v871_v22 = vmul.f32 3.8918573e-05, %v2036_v20  ;;  %986 = vmatpush.msrb.mxu3 %v904_v15  ;;  %v1171_v14 = vld [vmem:[#allocation10 + $0xf8] sm:$0xff] }
 0x274   :  { %v821_v36 = vadd.f32 0.00028619796, %v820_v28  ;;  %v832_v37 = vadd.f32 0.001143296, %v831_v29  ;;  %v861_v38 = vadd.f32 0.00028619796, %v860_v30  ;;  %1006 = vmatpush.msrb.mxu0 %v936_v7 }
 0x275   :  { %v872_v39 = vadd.f32 0.001143296, %v871_v22  ;;  %v905_v28 = vld [vmem:[#allocation8 + $0x18] sm:$0xff]  ;;  %987 = vmatpush.msrb.mxu3 %v902_v31 }
 0x276   :  { %v822_v42 = vmul.f32 %v821_v36, %v2034_v19  ;;  %v833_v40 = vmul.f32 %v832_v37, %v2034_v19  ;;  %v862_v21 = vmul.f32 %v861_v38, %v2036_v20  ;;  %v937_v22 = vld [vmem:[#allocation8 + $0x118] sm:$0xff]  ;;  %v903_v36 = vld [vmem:[#allocation8 + $0x8] sm:$0xff]  ;;  %1026 = vmatpush.msrb.mxu1 %v905_v28  ;;  %1007 = vmatpush.msrb.mxu0 %v934_v32 }
 0x277   :  { %v873_v46 = vmul.f32 %v872_v39, %v2036_v20  ;;  %v935_v39 = vld [vmem:[#allocation8 + $0x108] sm:$0xff]  ;;  %1046 = vmatpush.msra.mxu2 %v937_v22  ;;  %1176 = vmatpush.msra.mxu3 %v1155_v3 }
 0x278   :  { %v823_v52 = vadd.f32 0.0036580483, %v822_v42  ;;  %v834_v35 = vadd.f32 0.014752088, %v833_v40  ;;  %v863_v60 = vadd.f32 0.0036580483, %v862_v21  ;;  %1027 = vmatpush.msrb.mxu1 %v903_v36  ;;  %1196 = vmatpush.msra.mxu0 %v1171_v14 }
 0x279   :  { %v874_v54 = vadd.f32 0.014752088, %v873_v46  ;;  %1047 = vmatpush.msra.mxu2 %v935_v39  ;;  %v1167_v36 = vld [vmem:[#allocation10 + $0xd8] sm:$0xff]  ;;  %v1158_v14 = vld [vmem:[#allocation10 + $0x90] sm:$0xff]  ;;  %v1157_v3 = vld [vmem:[#allocation10 + $0x88] sm:$0xff] }
 0x27a   :  { %v835_v57 = vmul.f32 %v834_v35, %v2034_v19  ;;  %v824_v41 = vmul.f32 %v823_v52, %v2034_v19  ;;  %v864_v27 = vmul.f32 %v863_v60, %v2036_v20  ;;  %v1151_v39 = vld [vmem:[#allocation10 + $0x58] sm:$0xff] }
 0x27b   :  { %v875_v2 = vmul.f32 %v874_v54, %v2036_v20 }
 0x27c   :  { %v836_v6 = vadd.f32 0.112945676, %v835_v57  ;;  %v825_v18 = vadd.f32 0.05243302, %v824_v41  ;;  %v865_v30 = vadd.f32 0.05243302, %v864_v27 }
 0x27d   :  { %v876_v61 = vadd.f32 0.112945676, %v875_v2  ;;  %v815_v27 = vmul.f32 0.5, %v2020_v4  ;;  %v1154_v4 = vld [vmem:[#allocation10 + $0x70] sm:$0xff] }
 0x27e   :  { %v837_v13 = vmul.f32 %v836_v6, %v2034_v19  ;;  %v826_v37 = vmul.f32 %v825_v18, %v2034_v19  ;;  %v866_v24 = vmul.f32 %v865_v30, %v2036_v20  ;;  %v1170_v18 = vld [vmem:[#allocation10 + $0xf0] sm:$0xff]  ;;  %1177 = vmatpush.msra.mxu3 %v1154_v4  ;;  %v1168_v30 = vld [vmem:[#allocation10 + $0xe0] sm:$0xff]  ;;  %v1141_v4 = vld [vmem:[#allocation10 + $0x8] sm:$0xff] }
 0x27f   :  { %v877_v16 = vmul.f32 %v876_v61, %v2036_v20  ;;  %1197 = vmatpush.msra.mxu0 %v1170_v18 }
 0x280   :  { %v838_v1 = vadd.f32 0.4994258, %v837_v13  ;;  %v827_v62 = vadd.f32 0.18741608, %v826_v37  ;;  %v867_v42 = vadd.f32 0.18741608, %v866_v24 }
 0x281   :  { %v878_v26 = vadd.f32 0.4994258, %v877_v16 }
 0x282   :  { %v839_v29 = vmul.f32 %v838_v1, %v2034_v19  ;;  %v828_v21 = vmul.f32 %v827_v62, %v2034_v19  ;;  %v868_v45 = vmul.f32 %v867_v42, %v2036_v20  ;;  %v1169_v1 = vld [vmem:[#allocation10 + $0xe8] sm:$0xff]  ;;  %v1150_v42 = vld [vmem:[#allocation10 + $0x50] sm:$0xff] }
 0x283   :  { %v879_v34 = vmul.f32 %v878_v26, %v2036_v20  ;;  %1198 = vmatpush.msra.mxu0 %v1169_v1  ;;  %v1156_v1 = vld [vmem:[#allocation10 + $0x80] sm:$0xff] }
 0x284   :  { %v840_v38 = vadd.f32 1.0, %v839_v29  ;;  %v829_v51 = vadd.f32 1.1283791, %v828_v21  ;;  %v869_v58 = vadd.f32 1.1283791, %v868_v45  ;;  %v1153_v29 = vld [vmem:[#allocation10 + $0x68] sm:$0xff] }
 0x285   :  { %v880_v23 = vadd.f32 1.0, %v879_v34  ;;  %1178 = vmatpush.msra.mxu3 %v1153_v29  ;;  %1199 = vmatpush.msra.mxu0 %v1168_v30  ;;  %v1152_v34 = vld [vmem:[#allocation10 + $0x60] sm:$0xff] }
 0x286   :  { %1382 = vrcp.f32 %v840_v38  ;;  %v852_v52 = vand.u32 2147483648, %v840_v38  ;;  %v850_v54 = vand.u32 2147483647, %v840_v38  ;;  %vm846_vm14 = vweird.f32 %v840_v38  ;;  %v1164_v45 = vld [vmem:[#allocation10 + $0xc0] sm:$0xff] }
 0x287   :  { %1384 = vrcp.f32 %v880_v23  ;;  %v892_v8 = vand.u32 2147483648, %v880_v23  ;;  %v890_v57 = vand.u32 2147483647, %v880_v23  ;;  %vm886_vm0 = vweird.f32 %v880_v23  ;;  %1179 = vmatpush.msra.mxu3 %v1152_v34  ;;  %1200 = vmatpush.msra.mxu0 %v1167_v36 }
 0x288   :  { %v853_v19 = vor.u32 1.1754944e-38, %v852_v52  ;;  %v830_v20 = vmul.f32 %v829_v51, %v2024_v10  ;;  %vm851_vm1 = vcmp.eq.f32.partialorder %v850_v54, 8.507059e+37  ;;  %v870_v5 = vmul.f32 %v869_v58, %v2028_v11  ;;  %v966_v11 = vld [vmem:[%s2132_s9] sm:$0x3] }
 0x289   :  { %v893_v59 = vor.u32 1.1754944e-38, %v892_v8  ;;  %vm891_vm4 = vcmp.eq.f32.partialorder %v890_v57, 8.507059e+37  ;;  %v969_v16 = vperm.slane %v966_v11, 1  ;;  %v968_v7 = vperm.slane %v966_v11, 0  ;;  %1180 = vmatpush.msra.mxu3 %v1151_v39  ;;  %v1147_v57 = vld [vmem:[#allocation10 + $0x38] sm:$0xff] }
 0x28a   :  { %v1143_v11 = vld [vmem:[#allocation10 + $0x18] sm:$0xff] }
 0x28b   :  { %1181 = vmatpush.msra.mxu3 %v1150_v42 }
 0x28c   :  { %v1383_v40 = vpop.eup %1382 }
 0x28d   :  { %v1385_v43 = vpop.eup %1384  ;;  %v842_v44 = vmul.f32 %v1383_v40, %v840_v38  ;;  %vm847_vm12 = vweird.f32 %v1383_v40 }
 0x28e   :  { %v882_v46 = vmul.f32 %v1385_v43, %v880_v23  ;;  %vm887_vm13 = vweird.f32 %v1385_v43  ;;  %vm848_vm15 = vmor %vm846_vm14, %vm847_vm12  ;;  %v1166_v23 = vld [vmem:[#allocation10 + $0xd0] sm:$0xff] }
 0x28f   :  { %v843_v48 = vsub.f32 1.0, %v842_v44  ;;  %vm888_vm2 = vmor %vm886_vm0, %vm887_vm13  ;;  %1201 = vmatpush.msra.mxu0 %v1166_v23  ;;  %v1149_v44 = vld [vmem:[#allocation10 + $0x48] sm:$0xff] }
 0x290   :  { %v883_v35 = vsub.f32 1.0, %v882_v46  ;;  %1182 = vmatpush.msra.mxu3 %v1149_v44 }
 0x291   :  { %v844_v53 = vmul.f32 %v1383_v40, %v843_v48 }
 0x292   :  { %v884_v56 = vmul.f32 %v1385_v43, %v883_v35  ;;  %v1148_v35 = vld [vmem:[#allocation10 + $0x40] sm:$0xff] }
 0x293   :  { %v845_v60 = vadd.f32 %v1383_v40, %v844_v53  ;;  %v1163_v53 = vld [vmem:[#allocation10 + $0xb8] sm:$0xff]  ;;  %1183 = vmatpush.msra.mxu3 %v1148_v35 }
 0x294   :  { %v885_v47 = vadd.f32 %v1385_v43, %v884_v56 }
 0x295   :  { %v849_v0 = vsel %vm848_vm15, %v1383_v40, %v845_v60  ;;  %v1165_v40 = vld [vmem:[#allocation10 + $0xc8] sm:$0xff]  ;;  %v1162_v60 = vld [vmem:[#allocation10 + $0xb0] sm:$0xff]  ;;  %1184 = vmatpush.msra.mxu3 %v1147_v57 }
 0x296   :  { %v854_v2 = vsel %vm851_vm1, %v853_v19, %v849_v0  ;;  %v889_v50 = vsel %vm888_vm2, %v1385_v43, %v885_v47  ;;  %1202 = vmatpush.msra.mxu0 %v1165_v40 }
 0x297   :  { %v855_v41 = vmul.f32 %v854_v2, %v830_v20  ;;  %v894_v6 = vsel %vm891_vm4, %v893_v59, %v889_v50  ;;  %v1146_v59 = vld [vmem:[#allocation10 + $0x30] sm:$0xff]  ;;  %v1161_v2 = vld [vmem:[#allocation10 + $0xa8] sm:$0xff] }
 0x298   :  { %v895_v33 = vmul.f32 %v894_v6, %v870_v5  ;;  %1203 = vmatpush.msra.mxu0 %v1164_v45  ;;  %1185 = vmatpush.msra.mxu3 %v1146_v59  ;;  %v1145_v6 = vld [vmem:[#allocation10 + $0x28] sm:$0xff] }
 0x299   :  { %v1322_v61 = vclamps-f32 %v855_v41, 1.0 }
 0x29a   :  { %v1323_v9 = vclamps-f32 %v895_v33, 1.0  ;;  %1204 = vmatpush.msra.mxu0 %v1163_v53  ;;  %v1160_v33 = vld [vmem:[#allocation10 + $0xa0] sm:$0xff]  ;;  %1186 = vmatpush.msra.mxu3 %v1145_v6 }
 0x29b   :  { %v898_v13 = vadd.f32 1.0, %v1322_v61 }
 0x29c   :  { %v899_v10 = vadd.f32 1.0, %v1323_v9  ;;  %1205 = vmatpush.msra.mxu0 %v1162_v60 }
 0x29d   :  { %v900_v55 = vmul.f32 %v898_v13, %v814_v12  ;;  %v1144_v13 = vld [vmem:[#allocation10 + $0x20] sm:$0xff] }
 0x29e   :  { %v901_v63 = vmul.f32 %v899_v10, %v815_v27  ;;  %1206 = vmatpush.msra.mxu0 %v1161_v2  ;;  %v1159_v27 = vld [vmem:[#allocation10 + $0x98] sm:$0xff]  ;;  %1187 = vmatpush.msra.mxu3 %v1144_v13 }
 0x29f   :  { %988 = vmatmul.f32.vlgmr.msrb.gmra.mxu3 %v900_v55  ;;  %1028 = vmatmul.f32.vlgmr.msrb.gmra.mxu1 %v900_v55 }
 0x2a0   :  { %1008 = vmatmul.f32.vlgmr.msrb.gmra.mxu0 %v901_v63  ;;  %1048 = vmatmul.f32.vlgmr.msra.gmra.mxu2 %v901_v63 }
 0x2a1   :  { %1207 = vmatpush.msra.mxu0 %v1160_v33  ;;  %1188 = vmatpush.msra.mxu3 %v1143_v11 }
 0x2a3   :  { %1208 = vmatpush.msra.mxu0 %v1159_v27 }
 0x2a5   :  { %1209 = vmatpush.msra.mxu0 %v1158_v14 }
 0x2a7   :  { %1210 = vmatpush.msra.mxu0 %v1157_v3  ;;  %v1271_v3 = vld [vmem:[#allocation11 + $0x58] sm:$0xff] }
 0x2a9   :  { %1211 = vmatpush.msra.mxu0 %v1156_v1 }
 0x31c   :  { %v1029_v17 = vpop.f32.mrf.mxu1 }
 0x31d   :  { %v1030_v25 = vadd.f32 %v1029_v17, %v969_v16  ;;  %v1009_v22 = vpop.f32.mrf.mxu0 }
 0x322   :  { %v989_v15 = vpop.f32.mrf.mxu3 }
 0x323   :  { %v990_v26 = vadd.f32 %v989_v15, %v968_v7  ;;  %v1049_v28 = vpop.f32.mrf.mxu2  ;;  %v1142_v7 = vld [vmem:[#allocation10 + $0x10] sm:$0xff] }
 0x324   :  { %v2065_v31 = vadd.f32 %v1049_v28, %v1030_v25  ;;  %1189 = vmatpush.msra.mxu3 %v1142_v7  ;;  %v1140_v28 = vld [vmem:[#allocation10] sm:$0xff] }
 0x325   :  { %v2067_v32 = vadd.f32 %v1009_v22, %v990_v26 }
 0x326   :  { %v2071_v37 = vmul.f32 %v2065_v31, %v2003_v49  ;;  %1190 = vmatpush.msra.mxu3 %v1141_v4  ;;  %v1270_v4 = vld [vmem:[#allocation11 + $0x50] sm:$0xff] }
 0x327   :  { %v2075_v38 = vmul.f32 %v2067_v32, %v2003_v49  ;;  %v1052_v13 = vmul.f32 0.5, %v2067_v32  ;;  %v1272_v32 = vld [vmem:[#allocation11 + $0x60] sm:$0xff] }
 0x328   :  { %v1096_v24 = vmul.f32 %v2071_v37, %v2071_v37  ;;  %1191 = vmatpush.msra.mxu3 %v1140_v28  ;;  %v1268_v28 = vld [vmem:[#allocation11 + $0x40] sm:$0xff] }
 0x329   :  { %v1056_v62 = vmul.f32 %v2075_v38, %v2075_v38 }
 0x32a   :  { %v2081_v21 = vmin.f32 %v1096_v24, 16.0 }
 0x32b   :  { %v2083_v43 = vmin.f32 %v1056_v62, 16.0 }
 0x32c   :  { %v1098_v46 = vmul.f32 2.1237322e-06, %v2081_v21  ;;  %v1109_v48 = vmul.f32 3.8918573e-05, %v2081_v21 }
 0x32d   :  { %v1058_v51 = vmul.f32 2.1237322e-06, %v2083_v43  ;;  %v1069_v52 = vmul.f32 3.8918573e-05, %v2083_v43 }
 0x32e   :  { %v1099_v54 = vadd.f32 0.00028619796, %v1098_v46  ;;  %v1110_v8 = vadd.f32 0.001143296, %v1109_v48 }
 0x32f   :  { %v1059_v58 = vadd.f32 0.00028619796, %v1058_v51  ;;  %v1070_v56 = vadd.f32 0.001143296, %v1069_v52 }
 0x330   :  { %v1100_v19 = vmul.f32 %v1099_v54, %v2081_v21  ;;  %v1111_v47 = vmul.f32 %v1110_v8, %v2081_v21 }
 0x331   :  { %v1060_v20 = vmul.f32 %v1059_v58, %v2083_v43  ;;  %v1071_v0 = vmul.f32 %v1070_v56, %v2083_v43 }
 0x332   :  { %v1101_v5 = vadd.f32 0.0036580483, %v1100_v19  ;;  %v1112_v50 = vadd.f32 0.014752088, %v1111_v47 }
 0x333   :  { %v1072_v41 = vadd.f32 0.014752088, %v1071_v0  ;;  %v1061_v61 = vadd.f32 0.0036580483, %v1060_v20 }
 0x334   :  { %v1113_v9 = vmul.f32 %v1112_v50, %v2081_v21  ;;  %v1102_v10 = vmul.f32 %v1101_v5, %v2081_v21 }
 0x335   :  { %v1073_v12 = vmul.f32 %v1072_v41, %v2083_v43  ;;  %v1062_v16 = vmul.f32 %v1061_v61, %v2083_v43 }
 0x336   :  { %v1114_v55 = vadd.f32 0.112945676, %v1113_v9  ;;  %v1103_v25 = vadd.f32 0.05243302, %v1102_v10  ;;  %v1053_v9 = vmul.f32 0.5, %v2065_v31 }
 0x337   :  { %v1074_v63 = vadd.f32 0.112945676, %v1073_v12  ;;  %v1063_v29 = vadd.f32 0.05243302, %v1062_v16  ;;  %v1273_v16 = vld [vmem:[#allocation11 + $0x68] sm:$0xff] }
 0x338   :  { %v1115_v17 = vmul.f32 %v1114_v55, %v2081_v21  ;;  %v1104_v34 = vmul.f32 %v1103_v25, %v2081_v21  ;;  %v1275_v55 = vld [vmem:[#allocation11 + $0x78] sm:$0xff]  ;;  %v1269_v25 = vld [vmem:[#allocation11 + $0x48] sm:$0xff] }
 0x339   :  { %v1075_v18 = vmul.f32 %v1074_v63, %v2083_v43  ;;  %v1064_v23 = vmul.f32 %v1063_v29, %v2083_v43  ;;  %1280 = vmatpush.msra.mxu1 %v1275_v55  ;;  %v1274_v63 = vld [vmem:[#allocation11 + $0x70] sm:$0xff] }
 0x33a   :  { %v1116_v15 = vadd.f32 0.4994258, %v1115_v17  ;;  %v1105_v24 = vadd.f32 0.18741608, %v1104_v34 }
 0x33b   :  { %v1076_v26 = vadd.f32 0.4994258, %v1075_v18  ;;  %v1065_v62 = vadd.f32 0.18741608, %v1064_v23  ;;  %1281 = vmatpush.msra.mxu1 %v1274_v63  ;;  %v1265_v23 = vld [vmem:[#allocation11 + $0x28] sm:$0xff] }
 0x33c   :  { %v1117_v30 = vmul.f32 %v1116_v15, %v2081_v21  ;;  %v1106_v40 = vmul.f32 %v1105_v24, %v2081_v21 }
 0x33d   :  { %v1077_v22 = vmul.f32 %v1076_v26, %v2083_v43  ;;  %v1066_v46 = vmul.f32 %v1065_v62, %v2083_v43  ;;  %1282 = vmatpush.msra.mxu1 %v1273_v16 }
 0x33e   :  { %v1118_v36 = vadd.f32 1.0, %v1117_v30  ;;  %v1107_v35 = vadd.f32 1.1283791, %v1106_v40 }
 0x33f   :  { %v1078_v39 = vadd.f32 1.0, %v1077_v22  ;;  %v1067_v56 = vadd.f32 1.1283791, %v1066_v46  ;;  %1283 = vmatpush.msra.mxu1 %v1272_v32  ;;  %v1267_v22 = vld [vmem:[#allocation11 + $0x38] sm:$0xff]  ;;  %v1262_v46 = vld [vmem:[#allocation11 + $0x10] sm:$0xff] }
 0x340   :  { %1386 = vrcp.f32 %v1118_v36  ;;  %v1130_v53 = vand.u32 2147483648, %v1118_v36  ;;  %v1128_v58 = vand.u32 2147483647, %v1118_v36  ;;  %vm1124_vm7 = vweird.f32 %v1118_v36 }
 0x341   :  { %1388 = vrcp.f32 %v1078_v39  ;;  %v1090_v54 = vand.u32 2147483648, %v1078_v39  ;;  %v1088_v60 = vand.u32 2147483647, %v1078_v39  ;;  %vm1084_vm3 = vweird.f32 %v1078_v39  ;;  %1284 = vmatpush.msra.mxu1 %v1271_v3 }
 0x342   :  { %v1131_v47 = vor.u32 1.1754944e-38, %v1130_v53  ;;  %v1108_v20 = vmul.f32 %v1107_v35, %v2071_v37  ;;  %vm1129_vm10 = vcmp.eq.f32.partialorder %v1128_v58, 8.507059e+37  ;;  %v1068_v59 = vmul.f32 %v1067_v56, %v2075_v38  ;;  %v1344_v38 = vld [vmem:[%s2134_s11] ss:$0 sm:$0xff] }
 0x343   :  { %v1091_v43 = vor.u32 1.1754944e-38, %v1090_v54  ;;  %vm1089_vm11 = vcmp.eq.f32.partialorder %v1088_v60, 8.507059e+37  ;;  %1285 = vmatpush.msra.mxu1 %v1270_v4  ;;  %v1260_v35 = vld [vmem:[#allocation11] sm:$0xff] }
 0x345   :  { %1286 = vmatpush.msra.mxu1 %v1269_v25 }
 0x346   :  { %v1387_v42 = vpop.eup %1386 }
 0x347   :  { %v1389_v44 = vpop.eup %1388  ;;  %v1120_v45 = vmul.f32 %v1387_v42, %v1118_v36  ;;  %vm1125_vm5 = vweird.f32 %v1387_v42  ;;  %1287 = vmatpush.msra.mxu1 %v1268_v28 }
 0x348   :  { %v1080_v48 = vmul.f32 %v1389_v44, %v1078_v39  ;;  %vm1085_vm6 = vweird.f32 %v1389_v44  ;;  %vm1126_vm8 = vmor %vm1124_vm7, %vm1125_vm5  ;;  %v1266_v39 = vld [vmem:[#allocation11 + $0x30] sm:$0xff] }
 0x349   :  { %v1121_v51 = vsub.f32 1.0, %v1120_v45  ;;  %vm1086_vm9 = vmor %vm1084_vm3, %vm1085_vm6  ;;  %1288 = vmatpush.msra.mxu1 %v1267_v22 }
 0x34a   :  { %v1081_v52 = vsub.f32 1.0, %v1080_v48 }
 0x34b   :  { %v1122_v8 = vmul.f32 %v1387_v42, %v1121_v51  ;;  %1289 = vmatpush.msra.mxu1 %v1266_v39  ;;  %v1261_v51 = vld [vmem:[#allocation11 + $0x8] sm:$0xff] }
 0x34c   :  { %v1082_v57 = vmul.f32 %v1389_v44, %v1081_v52 }
 0x34d   :  { %v1123_v19 = vadd.f32 %v1387_v42, %v1122_v8  ;;  %1290 = vmatpush.msra.mxu1 %v1265_v23 }
 0x34e   :  { %v1083_v21 = vadd.f32 %v1389_v44, %v1082_v57 }
 0x34f   :  { %v1127_v0 = vsel %vm1126_vm8, %v1387_v42, %v1123_v19  ;;  %v1264_v42 = vld [vmem:[#allocation11 + $0x20] sm:$0xff] }
 0x350   :  { %v1087_v2 = vsel %vm1086_vm9, %v1389_v44, %v1083_v21  ;;  %v1132_v5 = vsel %vm1129_vm10, %v1131_v47, %v1127_v0  ;;  %1291 = vmatpush.msra.mxu1 %v1264_v42  ;;  %v1263_v44 = vld [vmem:[#allocation11 + $0x18] sm:$0xff] }
 0x351   :  { %v1092_v50 = vsel %vm1089_vm11, %v1091_v43, %v1087_v2  ;;  %v1133_v41 = vmul.f32 %v1132_v5, %v1108_v20 }
 0x352   :  { %v1093_v6 = vmul.f32 %v1092_v50, %v1068_v59  ;;  %1292 = vmatpush.msra.mxu1 %v1263_v44 }
 0x353   :  { %v1325_v33 = vclamps-f32 %v1133_v41, 1.0 }
 0x354   :  { %v1324_v61 = vclamps-f32 %v1093_v6, 1.0  ;;  %1293 = vmatpush.msra.mxu1 %v1262_v46 }
 0x355   :  { %v1137_v12 = vadd.f32 1.0, %v1325_v33 }
 0x356   :  { %v1136_v27 = vadd.f32 1.0, %v1324_v61  ;;  %1294 = vmatpush.msra.mxu1 %v1261_v51 }
 0x357   :  { %v1139_v10 = vmul.f32 %v1137_v12, %v1053_v9 }
 0x358   :  { %v1138_v37 = vmul.f32 %v1136_v27, %v1052_v13  ;;  %1295 = vmatpush.msra.mxu1 %v1260_v35  ;;  %v1345_v13 = vld [vmem:[%s2136_s13] ss:$0 sm:$0xff] }
 0x359   :  { %1212 = vmatmul.f32.vlgmr.msra.gmra.mxu0 %v1139_v10 }
 0x35a   :  { %1192 = vmatmul.f32.vlgmr.msra.gmra.mxu3 %v1138_v37 }
 0x3d6   :  { %v1213_v31 = vpop.f32.mrf.mxu0 }
 0x3dd   :  { %v1193_v11 = vpop.f32.mrf.mxu3 }
 0x3de   :  { %v1194_v14 = vadd.f32 %v1344_v38, %v1193_v11 }
 0x3e0   :  { %v2112_v17 = vadd.f32 %v1213_v31, %v1194_v14 }
 0x3e2   :  { %v1217_v7 = vmul.f32 %v2112_v17, %v2003_v49  ;;  %v1216_v61 = vmul.f32 0.5, %v2112_v17 }
 0x3e4   :  { %v1218_v18 = vmul.f32 %v1217_v7, %v1217_v7 }
 0x3e6   :  { %v1219_v1 = vmin.f32 %v1218_v18, 16.0 }
 0x3e8   :  { %v1220_v15 = vmul.f32 2.1237322e-06, %v1219_v1  ;;  %v1231_v26 = vmul.f32 3.8918573e-05, %v1219_v1 }
 0x3ea   :  { %v1221_v29 = vadd.f32 0.00028619796, %v1220_v15  ;;  %v1232_v30 = vadd.f32 0.001143296, %v1231_v26 }
 0x3ec   :  { %v1222_v34 = vmul.f32 %v1221_v29, %v1219_v1  ;;  %v1233_v36 = vmul.f32 %v1232_v30, %v1219_v1 }
 0x3ee   :  { %v1234_v49 = vadd.f32 0.014752088, %v1233_v36  ;;  %v1223_v24 = vadd.f32 0.0036580483, %v1222_v34 }
 0x3f0   :  { %v1235_v62 = vmul.f32 %v1234_v49, %v1219_v1  ;;  %v1224_v45 = vmul.f32 %v1223_v24, %v1219_v1 }
 0x3f2   :  { %v1236_v40 = vadd.f32 0.112945676, %v1235_v62  ;;  %v1225_v53 = vadd.f32 0.05243302, %v1224_v45 }
 0x3f4   :  { %v1237_v48 = vmul.f32 %v1236_v40, %v1219_v1  ;;  %v1226_v58 = vmul.f32 %v1225_v53, %v1219_v1 }
 0x3f6   :  { %v1238_v52 = vadd.f32 0.4994258, %v1237_v48  ;;  %v1227_v56 = vadd.f32 0.18741608, %v1226_v58 }
 0x3f8   :  { %v1239_v54 = vmul.f32 %v1238_v52, %v1219_v1  ;;  %v1228_v60 = vmul.f32 %v1227_v56, %v1219_v1 }
 0x3fa   :  { %v1240_v8 = vadd.f32 1.0, %v1239_v54  ;;  %v1229_v43 = vadd.f32 1.1283791, %v1228_v60 }
 0x3fc   :  { %1390 = vrcp.f32 %v1240_v8  ;;  %v1252_v47 = vand.u32 2147483648, %v1240_v8  ;;  %v1250_v0 = vand.u32 2147483647, %v1240_v8  ;;  %vm1246_vm13 = vweird.f32 %v1240_v8 }
 0x3fd   :  { %v1230_v5 = vmul.f32 %v1229_v43, %v1217_v7 }
 0x3fe   :  { %v1253_v2 = vor.u32 1.1754944e-38, %v1252_v47  ;;  %vm1251_vm15 = vcmp.eq.f32.partialorder %v1250_v0, 8.507059e+37 }
 0x402   :  { %v1391_v57 = vpop.eup %1390 }
 0x403   :  { %v1242_v19 = vmul.f32 %v1391_v57, %v1240_v8  ;;  %vm1247_vm12 = vweird.f32 %v1391_v57 }
 0x404   :  { %vm1248_vm14 = vmor %vm1246_vm13, %vm1247_vm12 }
 0x405   :  { %v1243_v21 = vsub.f32 1.0, %v1242_v19 }
 0x407   :  { %v1244_v20 = vmul.f32 %v1391_v57, %v1243_v21 }
 0x409   :  { %v1245_v59 = vadd.f32 %v1391_v57, %v1244_v20 }
 0x40b   :  { %v1249_v50 = vsel %vm1248_vm14, %v1391_v57, %v1245_v59 }
 0x40c   :  { %v1254_v41 = vsel %vm1251_vm15, %v1253_v2, %v1249_v50 }
 0x40d   :  { %v1255_v6 = vmul.f32 %v1254_v41, %v1230_v5 }
 0x40f   :  { %v1326_v33 = vclamps-f32 %v1255_v6, 1.0 }
 0x411   :  { %v1258_v9 = vadd.f32 1.0, %v1326_v33 }
 0x413   :  { %v1259_v12 = vmul.f32 %v1258_v9, %v1216_v61 }
 0x415   :  { %1296 = vmatmul.f32.vlgmr.msra.gmra.mxu1 %v1259_v12 }
 0x492   :  { %v1297_v27 = vpop.f32.mrf.mxu1 }
 0x493   :  { %v1298_v10 = vadd.f32 %v1345_v13, %v1297_v27 }
 0x495   :  { %1300 = vst [vmem:[#allocation13] sm:$0xff] %v1298_v10 }
 0x496   :  { %1311 = dma.vmem_to_hbm [thread:$0]  %s1307_s22, 128, %s1309_s6, [#allocation4]  }
 0x497   :  { %1568 = dma.done.wait [#allocation4], 128  }
 0x498   :  { %1569 = vsyncadd [#allocation4], 4294967168 }
 0x499   :  { %1316 = vsyncpa [#allocation3], 1 }
 0x49a   :  { %1317 = vsyncpa [#allocation6], 1 }
 0x49b   :  { %1318 = vsyncpa [#allocation9], 1 }
 0x49c   :  { %1319 = vsyncpa [#allocation12], 1 }
 0x49d   :  { %1320 = vsyncpa [#allocation4], 1 }

</bundles_post_ra>
